<compile_context>
chip_gen: v6e
topology: v6e:2x2x1
jax: 0.10.0
libtpu: 0.0.40
codegen_flags: <defaults>
</compile_context>

<pallas_src>
import functools

import jax
import jax.numpy as jnp
from jax.experimental import pallas as pl
from jax.experimental.pallas import tpu as pltpu

EPS = 1e-6

VEC_NAMES = [
    "ln1_a", "ln1_b", "ln2_a", "ln2_b", "ln3_a", "ln3_b",
    "sa_bq", "sa_bk", "sa_bv", "sa_bo",
    "ca_bq", "ca_bk", "ca_bv", "ca_bo",
]


# ---------------- shared math (pure jnp: used inside the kernel AND as reference) ------


def _dot_bf16(a, b):
    # bf16 operands, f32 accumulation: single MXU pass on v5e/v6e/v7x.
    return jnp.dot(a.astype(jnp.bfloat16), b.astype(jnp.bfloat16),
                   preferred_element_type=jnp.float32)


def _layernorm(x, a, b):
    # torch semantics: unbiased std (N-1), divide by (std + eps).
    d = x.shape[-1]
    mean = jnp.mean(x, axis=-1, keepdims=True)
    var = jnp.sum((x - mean) ** 2, axis=-1, keepdims=True) / (d - 1)
    return a * (x - mean) / (jnp.sqrt(var) + EPS) + b


def _attention_core(q, k, v, *, B, S, n_heads):
    # q,k,v: (B*S, D) f32, already projected + biased.  Per-batch, per-head softmax
    # attention; per-head contexts are lane-concatenated into a single (S, D) context
    # so the output projection can be done with ONE matmul by the caller.
    # Softmax uses an exact division (no approx reciprocal) so the kernel matches the
    # pure-JAX reference to within matmul accumulation order.
    D = q.shape[-1]
    d_k = D // n_heads
    scale = 1.0 / (d_k ** 0.5)
    ctx_rows = []
    for b in range(B):
        rs = slice(b * S, (b + 1) * S)
        qb, kb, vb = q[rs], k[rs], v[rs]
        heads = []
        for h in range(n_heads):
            cs = slice(h * d_k, (h + 1) * d_k)
            qh, kh, vh = qb[:, cs], kb[:, cs], vb[:, cs]
            s = _dot_bf16(qh, kh.T) * scale
            m = jnp.max(s, axis=-1, keepdims=True)
            e = jnp.exp(s - m)
            p = e / jnp.sum(e, axis=-1, keepdims=True)
            heads.append(_dot_bf16(p, vh))
        ctx_rows.append(jnp.concatenate(heads, axis=-1))      # (S, D)
    return jnp.concatenate(ctx_rows, axis=0)                   # (B*S, D)


def _forward_packed(x, wd, w_ff2, vecs, b_ff1, b_ff2, *, B, S, n_heads):
    # x: (B*S, D) f32.  wd: (D, 8D + D_FF) bf16 slab with column layout
    #   [sa_wq | sa_wk | sa_wv | sa_wo | ca_wq | ca_wk | ca_wv | ca_wo | ff_w1]
    # vecs: (14, D) f32 slab of LN scales/biases and attention biases (rows = VEC_NAMES).
    D = x.shape[-1]
    ln1_a, ln1_b = vecs[0:1], vecs[1:2]
    ln2_a, ln2_b = vecs[2:3], vecs[3:4]
    ln3_a, ln3_b = vecs[4:5], vecs[5:6]
    sa_bq, sa_bk, sa_bv, sa_bo = vecs[6:7], vecs[7:8], vecs[8:9], vecs[9:10]
    ca_bq, ca_bk, ca_bv, ca_bo = vecs[10:11], vecs[11:12], vecs[12:13], vecs[13:14]

    # ---- sublayer 1: self-attention, fused QKV projection -----------------
    ln1 = _layernorm(x, ln1_a, ln1_b)
    qkv = _dot_bf16(ln1, wd[:, 0:3 * D])                       # (B*S, 3D)
    q = qkv[:, 0:D] + sa_bq
    k = qkv[:, D:2 * D] + sa_bk
    v = qkv[:, 2 * D:3 * D] + sa_bv
    ctx = _attention_core(q, k, v, B=B, S=S, n_heads=n_heads)
    sa_out = _dot_bf16(ctx, wd[:, 3 * D:4 * D]) + sa_bo
    h1 = x + sa_out

    # ---- sublayer 2: cross-attention (query from LN2(x), key/value from h1) ----
    ln2 = _layernorm(x, ln2_a, ln2_b)
    q2 = _dot_bf16(ln2, wd[:, 4 * D:5 * D]) + ca_bq
    kv2 = _dot_bf16(h1, wd[:, 5 * D:7 * D])                    # (B*S, 2D)
    k2 = kv2[:, 0:D] + ca_bk
    v2 = kv2[:, D:2 * D] + ca_bv
    ctx2 = _attention_core(q2, k2, v2, B=B, S=S, n_heads=n_heads)
    ca_out = _dot_bf16(ctx2, wd[:, 7 * D:8 * D]) + ca_bo
    h2 = x + ca_out

    # ---- sublayer 3: position-wise FFN (no residual, matches the module) --
    ln3 = _layernorm(h2, ln3_a, ln3_b)
    hidden = jnp.maximum(_dot_bf16(ln3, wd[:, 8 * D:]) + b_ff1, 0.0)
    return _dot_bf16(hidden, w_ff2) + b_ff2


# ---------------- parameter packing ----------------------------------------------------


def _pack_params(params):
    D = params["sa_wq"].shape[0]
    wd = jnp.concatenate(
        [params["sa_wq"], params["sa_wk"], params["sa_wv"], params["sa_wo"],
         params["ca_wq"], params["ca_wk"], params["ca_wv"], params["ca_wo"],
         params["ff_w1"]], axis=1).astype(jnp.bfloat16)        # (D, 8D + D_FF)
    w_ff2 = params["ff_w2"].astype(jnp.bfloat16)               # (D_FF, final)
    vecs = jnp.concatenate([params[n].reshape(1, D) for n in VEC_NAMES], axis=0)  # (14, D) f32
    return wd, w_ff2, vecs, params["ff_b1"], params["ff_b2"]


# ---------------- Pallas kernel ---------------------------------------------------------


def block_kernel(x_ref, wd_ref, wff2_ref, vec_ref, bff1_ref, bff2_ref, out_ref,
                 *, B, S, n_heads):
    out = _forward_packed(
        x_ref[...], wd_ref[...], wff2_ref[...], vec_ref[...],
        bff1_ref[...], bff2_ref[...],
        B=B, S=S, n_heads=n_heads)
    out_ref[...] = out.astype(out_ref.dtype)


@functools.partial(jax.jit, static_argnames=("n_heads",))
def my_attention(fluid, obstacle, src_mask, tgt_mask, params, *, n_heads):
    # obstacle / src_mask / tgt_mask: unused (the PyTorch lambda always passes mask=None).
    del obstacle, src_mask, tgt_mask
    B, S, D = fluid.shape
    wd, w_ff2, vecs, b_ff1, b_ff2 = _pack_params(params)
    final_dims = w_ff2.shape[1]
    x2d = fluid.reshape(B * S, D)   # fold batch into rows (sublanes) for LN/proj/FFN

    kernel = functools.partial(block_kernel, B=B, S=S, n_heads=n_heads)
    out2d = pl.pallas_call(
        kernel,
        out_shape=jax.ShapeDtypeStruct((B * S, final_dims), jnp.float32),
        grid_spec=pltpu.PrefetchScalarGridSpec(
            num_scalar_prefetch=0,
            grid=(1,),
            in_specs=[
                pl.BlockSpec((B * S, D), lambda i: (0, 0)),
                pl.BlockSpec(wd.shape, lambda i: (0, 0)),
                pl.BlockSpec(w_ff2.shape, lambda i: (0, 0)),
                pl.BlockSpec(vecs.shape, lambda i: (0, 0)),
                pl.BlockSpec(b_ff1.shape, lambda i: (0, 0)),
                pl.BlockSpec(b_ff2.shape, lambda i: (0, 0)),
            ],
            out_specs=pl.BlockSpec((B * S, final_dims), lambda i: (0, 0)),
        ),
        compiler_params=pltpu.CompilerParams(dimension_semantics=("arbitrary",)),
    )(x2d, wd, w_ff2, vecs, b_ff1, b_ff2)
    return out2d.reshape(B, S, final_dims)


# ---------------- deterministic parameter init & reference ------------------------------


def init_params(key, d_model, d_ff, final_dims):
    w_shapes = [
        ("sa_wq", d_model, d_model), ("sa_wk", d_model, d_model),
        ("sa_wv", d_model, d_model), ("sa_wo", d_model, d_model),
        ("ca_wq", d_model, d_model), ("ca_wk", d_model, d_model),
        ("ca_wv", d_model, d_model), ("ca_wo", d_model, d_model),
        ("ff_w1", d_model, d_ff), ("ff_w2", d_ff, final_dims),
    ]
    b_shapes = [
        ("sa_bq", d_model), ("sa_bk", d_model), ("sa_bv", d_model), ("sa_bo", d_model),
        ("ca_bq", d_model), ("ca_bk", d_model), ("ca_bv", d_model), ("ca_bo", d_model),
        ("ff_b1", d_ff), ("ff_b2", final_dims),
    ]
    keys = jax.random.split(key, len(w_shapes) + len(b_shapes))
    p = {}
    for (name, din, dout), k in zip(w_shapes, keys[: len(w_shapes)]):
        p[name] = (jax.random.normal(k, (din, dout), jnp.float32) / (din ** 0.5)).astype(jnp.float32)
    for (name, dout), k in zip(b_shapes, keys[len(w_shapes):]):
        p[name] = (jax.random.normal(k, (1, dout), jnp.float32) * 0.02).astype(jnp.float32)
    for i in (1, 2, 3):
        p[f"ln{i}_a"] = jnp.ones((1, d_model), jnp.float32)   # a_2 = ones
        p[f"ln{i}_b"] = jnp.zeros((1, d_model), jnp.float32)  # b_2 = zeros
    return p


def reference_forward(fluid, params, n_heads):
    B, S, D = fluid.shape
    wd, w_ff2, vecs, b_ff1, b_ff2 = _pack_params(params)
    out = _forward_packed(fluid.reshape(B * S, D), wd, w_ff2, vecs, b_ff1, b_ff2,
                          B=B, S=S, n_heads=n_heads)
    return out.reshape(B, S, w_ff2.shape[1])


# ---------------- main -------------------------------------------------------------------

if __name__ == "__main__":
    B, S, D = 2, 8, 32          # batch, sequence, emb_dims
    N_HEADS = 4
    D_FF = 64
    FINAL_DIMS = 32             # feed_forward output width

    key = jax.random.PRNGKey(0)
    k_fluid, k_obs, k_params = jax.random.split(key, 3)
    fluid = jax.random.normal(k_fluid, (B, S, D), dtype=jnp.float32)
    obstacle = jax.random.normal(k_obs, (B, S, D), dtype=jnp.float32)  # unused by forward
    params = init_params(k_params, D, D_FF, FINAL_DIMS)

    out = my_attention(fluid, obstacle, None, None, params, n_heads=N_HEADS)
    out = jax.block_until_ready(out)

    ref = reference_forward(fluid, params, N_HEADS)
    assert out.shape == (B, S, FINAL_DIMS), out.shape
    # Kernel and reference apply identical bf16 quantization and exact softmax; only
    # accumulation-order / exp-implementation differences remain.
    err = float(jnp.max(jnp.abs(out - ref)))
    assert jnp.allclose(out, ref, atol=5e-3, rtol=5e-3), err

    print("KERNEL_OK")
</pallas_src>

<mosaic_0001>
module attributes {stable_mosaic.version = 11 : i64} {
  func.func @block_kernel(%arg0: i32, %arg1: memref<16x32xf32, #tpu.memory_space<vmem>>, %arg2: memref<32x320xbf16, #tpu.memory_space<vmem>>, %arg3: memref<64x32xbf16, #tpu.memory_space<vmem>>, %arg4: memref<14x32xf32, #tpu.memory_space<vmem>>, %arg5: memref<1x64xf32, #tpu.memory_space<vmem>>, %arg6: memref<1x32xf32, #tpu.memory_space<vmem>>, %arg7: memref<16x32xf32, #tpu.memory_space<vmem>>) attributes {dimension_semantics = [#tpu.dimension_semantics<arbitrary>], iteration_bounds = array<i64: 1>, scalar_prefetch = 0 : i64, scratch_operands = 0 : i64, tpu.core_type = #tpu.core_type<tc>, window_params = [{pipeline_mode = #tpu.pipeline_mode<synchronous>, transform_indices = @transform_0, window_bounds = array<i64: 16, 32>}, {pipeline_mode = #tpu.pipeline_mode<synchronous>, transform_indices = @transform_1, window_bounds = array<i64: 32, 320>}, {pipeline_mode = #tpu.pipeline_mode<synchronous>, transform_indices = @transform_2, window_bounds = array<i64: 64, 32>}, {pipeline_mode = #tpu.pipeline_mode<synchronous>, transform_indices = @transform_3, window_bounds = array<i64: 14, 32>}, {pipeline_mode = #tpu.pipeline_mode<synchronous>, transform_indices = @transform_4, window_bounds = array<i64: 1, 64>}, {pipeline_mode = #tpu.pipeline_mode<synchronous>, transform_indices = @transform_5, window_bounds = array<i64: 1, 32>}, {pipeline_mode = #tpu.pipeline_mode<synchronous>, transform_indices = @transform_6, window_bounds = array<i64: 16, 32>}]} {
    %c0 = arith.constant 0 : index
    %c0_0 = arith.constant 0 : index
    %0 = vector.load %arg1[%c0, %c0_0] : memref<16x32xf32, #tpu.memory_space<vmem>>, vector<16x32xf32>
    %c0_1 = arith.constant 0 : index
    %c0_2 = arith.constant 0 : index
    %1 = vector.load %arg2[%c0_1, %c0_2] : memref<32x320xbf16, #tpu.memory_space<vmem>>, vector<32x320xbf16>
    %c0_3 = arith.constant 0 : index
    %c0_4 = arith.constant 0 : index
    %2 = vector.load %arg3[%c0_3, %c0_4] : memref<64x32xbf16, #tpu.memory_space<vmem>>, vector<64x32xbf16>
    %c0_5 = arith.constant 0 : index
    %c0_6 = arith.constant 0 : index
    %3 = vector.load %arg4[%c0_5, %c0_6] : memref<14x32xf32, #tpu.memory_space<vmem>>, vector<14x32xf32>
    %c0_7 = arith.constant 0 : index
    %c0_8 = arith.constant 0 : index
    %4 = vector.load %arg5[%c0_7, %c0_8] : memref<1x64xf32, #tpu.memory_space<vmem>>, vector<1x64xf32>
    %c0_9 = arith.constant 0 : index
    %c0_10 = arith.constant 0 : index
    %5 = vector.load %arg6[%c0_9, %c0_10] : memref<1x32xf32, #tpu.memory_space<vmem>>, vector<1x32xf32>
    %6 = vector.extract_strided_slice %3 {offsets = [0, 0], sizes = [1, 32], strides = [1, 1]} : vector<14x32xf32> to vector<1x32xf32>
    %7 = vector.extract_strided_slice %3 {offsets = [1, 0], sizes = [1, 32], strides = [1, 1]} : vector<14x32xf32> to vector<1x32xf32>
    %8 = vector.extract_strided_slice %3 {offsets = [2, 0], sizes = [1, 32], strides = [1, 1]} : vector<14x32xf32> to vector<1x32xf32>
    %9 = vector.extract_strided_slice %3 {offsets = [3, 0], sizes = [1, 32], strides = [1, 1]} : vector<14x32xf32> to vector<1x32xf32>
    %10 = vector.extract_strided_slice %3 {offsets = [4, 0], sizes = [1, 32], strides = [1, 1]} : vector<14x32xf32> to vector<1x32xf32>
    %11 = vector.extract_strided_slice %3 {offsets = [5, 0], sizes = [1, 32], strides = [1, 1]} : vector<14x32xf32> to vector<1x32xf32>
    %12 = vector.extract_strided_slice %3 {offsets = [6, 0], sizes = [1, 32], strides = [1, 1]} : vector<14x32xf32> to vector<1x32xf32>
    %13 = vector.extract_strided_slice %3 {offsets = [7, 0], sizes = [1, 32], strides = [1, 1]} : vector<14x32xf32> to vector<1x32xf32>
    %14 = vector.extract_strided_slice %3 {offsets = [8, 0], sizes = [1, 32], strides = [1, 1]} : vector<14x32xf32> to vector<1x32xf32>
    %15 = vector.extract_strided_slice %3 {offsets = [9, 0], sizes = [1, 32], strides = [1, 1]} : vector<14x32xf32> to vector<1x32xf32>
    %16 = vector.extract_strided_slice %3 {offsets = [10, 0], sizes = [1, 32], strides = [1, 1]} : vector<14x32xf32> to vector<1x32xf32>
    %17 = vector.extract_strided_slice %3 {offsets = [11, 0], sizes = [1, 32], strides = [1, 1]} : vector<14x32xf32> to vector<1x32xf32>
    %18 = vector.extract_strided_slice %3 {offsets = [12, 0], sizes = [1, 32], strides = [1, 1]} : vector<14x32xf32> to vector<1x32xf32>
    %19 = vector.extract_strided_slice %3 {offsets = [13, 0], sizes = [1, 32], strides = [1, 1]} : vector<14x32xf32> to vector<1x32xf32>
    %cst = arith.constant dense<0.000000e+00> : vector<16xf32>
    %20 = vector.multi_reduction <add>, %0, %cst [1] : vector<16x32xf32> to vector<16xf32>
    %21 = vector.shape_cast %20 : vector<16xf32> to vector<16x1xf32>
    %cst_11 = arith.constant 3.200000e+01 : f32
    %22 = vector.broadcast %cst_11 : f32 to vector<16x1xf32>
    %23 = arith.divf %21, %22 : vector<16x1xf32>
    %24 = vector.broadcast %23 : vector<16x1xf32> to vector<16x32xf32>
    %25 = arith.subf %0, %24 : vector<16x32xf32>
    %26 = arith.mulf %25, %25 : vector<16x32xf32>
    %cst_12 = arith.constant dense<0.000000e+00> : vector<16xf32>
    %27 = vector.multi_reduction <add>, %26, %cst_12 [1] : vector<16x32xf32> to vector<16xf32>
    %28 = vector.shape_cast %27 : vector<16xf32> to vector<16x1xf32>
    %cst_13 = arith.constant 3.100000e+01 : f32
    %29 = vector.broadcast %cst_13 : f32 to vector<16x1xf32>
    %30 = arith.divf %28, %29 : vector<16x1xf32>
    %31 = vector.broadcast %23 : vector<16x1xf32> to vector<16x32xf32>
    %32 = arith.subf %0, %31 : vector<16x32xf32>
    %33 = vector.broadcast %6 : vector<1x32xf32> to vector<16x32xf32>
    %34 = arith.mulf %33, %32 : vector<16x32xf32>
    %35 = math.sqrt %30 : vector<16x1xf32>
    %cst_14 = arith.constant 9.99999997E-7 : f32
    %36 = vector.broadcast %cst_14 : f32 to vector<16x1xf32>
    %37 = arith.addf %35, %36 : vector<16x1xf32>
    %38 = vector.broadcast %37 : vector<16x1xf32> to vector<16x32xf32>
    %39 = arith.divf %34, %38 : vector<16x32xf32>
    %40 = vector.broadcast %7 : vector<1x32xf32> to vector<16x32xf32>
    %41 = arith.addf %39, %40 : vector<16x32xf32>
    %42 = vector.extract_strided_slice %1 {offsets = [0, 0], sizes = [32, 96], strides = [1, 1]} : vector<32x320xbf16> to vector<32x96xbf16>
    %43 = arith.truncf %41 : vector<16x32xf32> to vector<16x32xbf16>
    %cst_15 = arith.constant dense<0.000000e+00> : vector<16x96xf32>
    %44 = tpu.matmul %43, %42, %cst_15 {dimension_numbers = #tpu.dot_dimension_numbers<[1], [0], [0], [1], [0, 0, 1, 1], [], []>} : vector<16x32xbf16>, vector<32x96xbf16>, vector<16x96xf32> -> vector<16x96xf32>
    %45 = vector.extract_strided_slice %44 {offsets = [0, 0], sizes = [16, 32], strides = [1, 1]} : vector<16x96xf32> to vector<16x32xf32>
    %46 = vector.broadcast %12 : vector<1x32xf32> to vector<16x32xf32>
    %47 = arith.addf %45, %46 : vector<16x32xf32>
    %48 = vector.extract_strided_slice %44 {offsets = [0, 32], sizes = [16, 32], strides = [1, 1]} : vector<16x96xf32> to vector<16x32xf32>
    %49 = vector.broadcast %13 : vector<1x32xf32> to vector<16x32xf32>
    %50 = arith.addf %48, %49 : vector<16x32xf32>
    %51 = vector.extract_strided_slice %44 {offsets = [0, 64], sizes = [16, 32], strides = [1, 1]} : vector<16x96xf32> to vector<16x32xf32>
    %52 = vector.broadcast %14 : vector<1x32xf32> to vector<16x32xf32>
    %53 = arith.addf %51, %52 : vector<16x32xf32>
    %54 = vector.extract_strided_slice %47 {offsets = [0, 0], sizes = [8, 32], strides = [1, 1]} : vector<16x32xf32> to vector<8x32xf32>
    %55 = vector.extract_strided_slice %50 {offsets = [0, 0], sizes = [8, 32], strides = [1, 1]} : vector<16x32xf32> to vector<8x32xf32>
    %56 = vector.extract_strided_slice %53 {offsets = [0, 0], sizes = [8, 32], strides = [1, 1]} : vector<16x32xf32> to vector<8x32xf32>
    %57 = vector.extract_strided_slice %54 {offsets = [0, 0], sizes = [8, 8], strides = [1, 1]} : vector<8x32xf32> to vector<8x8xf32>
    %58 = vector.extract_strided_slice %55 {offsets = [0, 0], sizes = [8, 8], strides = [1, 1]} : vector<8x32xf32> to vector<8x8xf32>
    %59 = vector.extract_strided_slice %56 {offsets = [0, 0], sizes = [8, 8], strides = [1, 1]} : vector<8x32xf32> to vector<8x8xf32>
    %60 = tpu.transpose %58, [1, 0] : vector<8x8xf32> -> vector<8x8xf32>
    %61 = arith.truncf %57 : vector<8x8xf32> to vector<8x8xbf16>
    %62 = arith.truncf %60 : vector<8x8xf32> to vector<8x8xbf16>
    %cst_16 = arith.constant dense<0.000000e+00> : vector<8x8xf32>
    %63 = tpu.matmul %61, %62, %cst_16 {dimension_numbers = #tpu.dot_dimension_numbers<[1], [0], [0], [1], [0, 0, 1, 1], [], []>} : vector<8x8xbf16>, vector<8x8xbf16>, vector<8x8xf32> -> vector<8x8xf32>
    %cst_17 = arith.constant 0.353553385 : f32
    %64 = vector.broadcast %cst_17 : f32 to vector<8x8xf32>
    %65 = arith.mulf %63, %64 : vector<8x8xf32>
    %cst_18 = arith.constant dense<0xFF800000> : vector<8xf32>
    %66 = vector.multi_reduction <maximumf>, %65, %cst_18 [1] : vector<8x8xf32> to vector<8xf32>
    %67 = vector.shape_cast %66 : vector<8xf32> to vector<8x1xf32>
    %68 = vector.broadcast %67 : vector<8x1xf32> to vector<8x8xf32>
    %69 = arith.subf %65, %68 : vector<8x8xf32>
    %70 = math.exp %69 : vector<8x8xf32>
    %cst_19 = arith.constant dense<0.000000e+00> : vector<8xf32>
    %71 = vector.multi_reduction <add>, %70, %cst_19 [1] : vector<8x8xf32> to vector<8xf32>
    %72 = vector.shape_cast %71 : vector<8xf32> to vector<8x1xf32>
    %73 = vector.broadcast %72 : vector<8x1xf32> to vector<8x8xf32>
    %74 = arith.divf %70, %73 : vector<8x8xf32>
    %75 = arith.truncf %74 : vector<8x8xf32> to vector<8x8xbf16>
    %76 = arith.truncf %59 : vector<8x8xf32> to vector<8x8xbf16>
    %cst_20 = arith.constant dense<0.000000e+00> : vector<8x8xf32>
    %77 = tpu.matmul %75, %76, %cst_20 {dimension_numbers = #tpu.dot_dimension_numbers<[1], [0], [0], [1], [0, 0, 1, 1], [], []>} : vector<8x8xbf16>, vector<8x8xbf16>, vector<8x8xf32> -> vector<8x8xf32>
    %78 = vector.extract_strided_slice %54 {offsets = [0, 8], sizes = [8, 8], strides = [1, 1]} : vector<8x32xf32> to vector<8x8xf32>
    %79 = vector.extract_strided_slice %55 {offsets = [0, 8], sizes = [8, 8], strides = [1, 1]} : vector<8x32xf32> to vector<8x8xf32>
    %80 = vector.extract_strided_slice %56 {offsets = [0, 8], sizes = [8, 8], strides = [1, 1]} : vector<8x32xf32> to vector<8x8xf32>
    %81 = tpu.transpose %79, [1, 0] : vector<8x8xf32> -> vector<8x8xf32>
    %82 = arith.truncf %78 : vector<8x8xf32> to vector<8x8xbf16>
    %83 = arith.truncf %81 : vector<8x8xf32> to vector<8x8xbf16>
    %cst_21 = arith.constant dense<0.000000e+00> : vector<8x8xf32>
    %84 = tpu.matmul %82, %83, %cst_21 {dimension_numbers = #tpu.dot_dimension_numbers<[1], [0], [0], [1], [0, 0, 1, 1], [], []>} : vector<8x8xbf16>, vector<8x8xbf16>, vector<8x8xf32> -> vector<8x8xf32>
    %cst_22 = arith.constant 0.353553385 : f32
    %85 = vector.broadcast %cst_22 : f32 to vector<8x8xf32>
    %86 = arith.mulf %84, %85 : vector<8x8xf32>
    %cst_23 = arith.constant dense<0xFF800000> : vector<8xf32>
    %87 = vector.multi_reduction <maximumf>, %86, %cst_23 [1] : vector<8x8xf32> to vector<8xf32>
    %88 = vector.shape_cast %87 : vector<8xf32> to vector<8x1xf32>
    %89 = vector.broadcast %88 : vector<8x1xf32> to vector<8x8xf32>
    %90 = arith.subf %86, %89 : vector<8x8xf32>
    %91 = math.exp %90 : vector<8x8xf32>
    %cst_24 = arith.constant dense<0.000000e+00> : vector<8xf32>
    %92 = vector.multi_reduction <add>, %91, %cst_24 [1] : vector<8x8xf32> to vector<8xf32>
    %93 = vector.shape_cast %92 : vector<8xf32> to vector<8x1xf32>
    %94 = vector.broadcast %93 : vector<8x1xf32> to vector<8x8xf32>
    %95 = arith.divf %91, %94 : vector<8x8xf32>
    %96 = arith.truncf %95 : vector<8x8xf32> to vector<8x8xbf16>
    %97 = arith.truncf %80 : vector<8x8xf32> to vector<8x8xbf16>
    %cst_25 = arith.constant dense<0.000000e+00> : vector<8x8xf32>
    %98 = tpu.matmul %96, %97, %cst_25 {dimension_numbers = #tpu.dot_dimension_numbers<[1], [0], [0], [1], [0, 0, 1, 1], [], []>} : vector<8x8xbf16>, vector<8x8xbf16>, vector<8x8xf32> -> vector<8x8xf32>
    %99 = vector.extract_strided_slice %54 {offsets = [0, 16], sizes = [8, 8], strides = [1, 1]} : vector<8x32xf32> to vector<8x8xf32>
    %100 = vector.extract_strided_slice %55 {offsets = [0, 16], sizes = [8, 8], strides = [1, 1]} : vector<8x32xf32> to vector<8x8xf32>
    %101 = vector.extract_strided_slice %56 {offsets = [0, 16], sizes = [8, 8], strides = [1, 1]} : vector<8x32xf32> to vector<8x8xf32>
    %102 = tpu.transpose %100, [1, 0] : vector<8x8xf32> -> vector<8x8xf32>
    %103 = arith.truncf %99 : vector<8x8xf32> to vector<8x8xbf16>
    %104 = arith.truncf %102 : vector<8x8xf32> to vector<8x8xbf16>
    %cst_26 = arith.constant dense<0.000000e+00> : vector<8x8xf32>
    %105 = tpu.matmul %103, %104, %cst_26 {dimension_numbers = #tpu.dot_dimension_numbers<[1], [0], [0], [1], [0, 0, 1, 1], [], []>} : vector<8x8xbf16>, vector<8x8xbf16>, vector<8x8xf32> -> vector<8x8xf32>
    %cst_27 = arith.constant 0.353553385 : f32
    %106 = vector.broadcast %cst_27 : f32 to vector<8x8xf32>
    %107 = arith.mulf %105, %106 : vector<8x8xf32>
    %cst_28 = arith.constant dense<0xFF800000> : vector<8xf32>
    %108 = vector.multi_reduction <maximumf>, %107, %cst_28 [1] : vector<8x8xf32> to vector<8xf32>
    %109 = vector.shape_cast %108 : vector<8xf32> to vector<8x1xf32>
    %110 = vector.broadcast %109 : vector<8x1xf32> to vector<8x8xf32>
    %111 = arith.subf %107, %110 : vector<8x8xf32>
    %112 = math.exp %111 : vector<8x8xf32>
    %cst_29 = arith.constant dense<0.000000e+00> : vector<8xf32>
    %113 = vector.multi_reduction <add>, %112, %cst_29 [1] : vector<8x8xf32> to vector<8xf32>
    %114 = vector.shape_cast %113 : vector<8xf32> to vector<8x1xf32>
    %115 = vector.broadcast %114 : vector<8x1xf32> to vector<8x8xf32>
    %116 = arith.divf %112, %115 : vector<8x8xf32>
    %117 = arith.truncf %116 : vector<8x8xf32> to vector<8x8xbf16>
    %118 = arith.truncf %101 : vector<8x8xf32> to vector<8x8xbf16>
    %cst_30 = arith.constant dense<0.000000e+00> : vector<8x8xf32>
    %119 = tpu.matmul %117, %118, %cst_30 {dimension_numbers = #tpu.dot_dimension_numbers<[1], [0], [0], [1], [0, 0, 1, 1], [], []>} : vector<8x8xbf16>, vector<8x8xbf16>, vector<8x8xf32> -> vector<8x8xf32>
    %120 = vector.extract_strided_slice %54 {offsets = [0, 24], sizes = [8, 8], strides = [1, 1]} : vector<8x32xf32> to vector<8x8xf32>
    %121 = vector.extract_strided_slice %55 {offsets = [0, 24], sizes = [8, 8], strides = [1, 1]} : vector<8x32xf32> to vector<8x8xf32>
    %122 = vector.extract_strided_slice %56 {offsets = [0, 24], sizes = [8, 8], strides = [1, 1]} : vector<8x32xf32> to vector<8x8xf32>
    %123 = tpu.transpose %121, [1, 0] : vector<8x8xf32> -> vector<8x8xf32>
    %124 = arith.truncf %120 : vector<8x8xf32> to vector<8x8xbf16>
    %125 = arith.truncf %123 : vector<8x8xf32> to vector<8x8xbf16>
    %cst_31 = arith.constant dense<0.000000e+00> : vector<8x8xf32>
    %126 = tpu.matmul %124, %125, %cst_31 {dimension_numbers = #tpu.dot_dimension_numbers<[1], [0], [0], [1], [0, 0, 1, 1], [], []>} : vector<8x8xbf16>, vector<8x8xbf16>, vector<8x8xf32> -> vector<8x8xf32>
    %cst_32 = arith.constant 0.353553385 : f32
    %127 = vector.broadcast %cst_32 : f32 to vector<8x8xf32>
    %128 = arith.mulf %126, %127 : vector<8x8xf32>
    %cst_33 = arith.constant dense<0xFF800000> : vector<8xf32>
    %129 = vector.multi_reduction <maximumf>, %128, %cst_33 [1] : vector<8x8xf32> to vector<8xf32>
    %130 = vector.shape_cast %129 : vector<8xf32> to vector<8x1xf32>
    %131 = vector.broadcast %130 : vector<8x1xf32> to vector<8x8xf32>
    %132 = arith.subf %128, %131 : vector<8x8xf32>
    %133 = math.exp %132 : vector<8x8xf32>
    %cst_34 = arith.constant dense<0.000000e+00> : vector<8xf32>
    %134 = vector.multi_reduction <add>, %133, %cst_34 [1] : vector<8x8xf32> to vector<8xf32>
    %135 = vector.shape_cast %134 : vector<8xf32> to vector<8x1xf32>
    %136 = vector.broadcast %135 : vector<8x1xf32> to vector<8x8xf32>
    %137 = arith.divf %133, %136 : vector<8x8xf32>
    %138 = arith.truncf %137 : vector<8x8xf32> to vector<8x8xbf16>
    %139 = arith.truncf %122 : vector<8x8xf32> to vector<8x8xbf16>
    %cst_35 = arith.constant dense<0.000000e+00> : vector<8x8xf32>
    %140 = tpu.matmul %138, %139, %cst_35 {dimension_numbers = #tpu.dot_dimension_numbers<[1], [0], [0], [1], [0, 0, 1, 1], [], []>} : vector<8x8xbf16>, vector<8x8xbf16>, vector<8x8xf32> -> vector<8x8xf32>
    %141 = tpu.concatenate %77, %98, %119, %140 in 1 : vector<8x8xf32>, vector<8x8xf32>, vector<8x8xf32>, vector<8x8xf32> -> vector<8x32xf32>
    %142 = vector.extract_strided_slice %47 {offsets = [8, 0], sizes = [8, 32], strides = [1, 1]} : vector<16x32xf32> to vector<8x32xf32>
    %143 = vector.extract_strided_slice %50 {offsets = [8, 0], sizes = [8, 32], strides = [1, 1]} : vector<16x32xf32> to vector<8x32xf32>
    %144 = vector.extract_strided_slice %53 {offsets = [8, 0], sizes = [8, 32], strides = [1, 1]} : vector<16x32xf32> to vector<8x32xf32>
    %145 = vector.extract_strided_slice %142 {offsets = [0, 0], sizes = [8, 8], strides = [1, 1]} : vector<8x32xf32> to vector<8x8xf32>
    %146 = vector.extract_strided_slice %143 {offsets = [0, 0], sizes = [8, 8], strides = [1, 1]} : vector<8x32xf32> to vector<8x8xf32>
    %147 = vector.extract_strided_slice %144 {offsets = [0, 0], sizes = [8, 8], strides = [1, 1]} : vector<8x32xf32> to vector<8x8xf32>
    %148 = tpu.transpose %146, [1, 0] : vector<8x8xf32> -> vector<8x8xf32>
    %149 = arith.truncf %145 : vector<8x8xf32> to vector<8x8xbf16>
    %150 = arith.truncf %148 : vector<8x8xf32> to vector<8x8xbf16>
    %cst_36 = arith.constant dense<0.000000e+00> : vector<8x8xf32>
    %151 = tpu.matmul %149, %150, %cst_36 {dimension_numbers = #tpu.dot_dimension_numbers<[1], [0], [0], [1], [0, 0, 1, 1], [], []>} : vector<8x8xbf16>, vector<8x8xbf16>, vector<8x8xf32> -> vector<8x8xf32>
    %cst_37 = arith.constant 0.353553385 : f32
    %152 = vector.broadcast %cst_37 : f32 to vector<8x8xf32>
    %153 = arith.mulf %151, %152 : vector<8x8xf32>
    %cst_38 = arith.constant dense<0xFF800000> : vector<8xf32>
    %154 = vector.multi_reduction <maximumf>, %153, %cst_38 [1] : vector<8x8xf32> to vector<8xf32>
    %155 = vector.shape_cast %154 : vector<8xf32> to vector<8x1xf32>
    %156 = vector.broadcast %155 : vector<8x1xf32> to vector<8x8xf32>
    %157 = arith.subf %153, %156 : vector<8x8xf32>
    %158 = math.exp %157 : vector<8x8xf32>
    %cst_39 = arith.constant dense<0.000000e+00> : vector<8xf32>
    %159 = vector.multi_reduction <add>, %158, %cst_39 [1] : vector<8x8xf32> to vector<8xf32>
    %160 = vector.shape_cast %159 : vector<8xf32> to vector<8x1xf32>
    %161 = vector.broadcast %160 : vector<8x1xf32> to vector<8x8xf32>
    %162 = arith.divf %158, %161 : vector<8x8xf32>
    %163 = arith.truncf %162 : vector<8x8xf32> to vector<8x8xbf16>
    %164 = arith.truncf %147 : vector<8x8xf32> to vector<8x8xbf16>
    %cst_40 = arith.constant dense<0.000000e+00> : vector<8x8xf32>
    %165 = tpu.matmul %163, %164, %cst_40 {dimension_numbers = #tpu.dot_dimension_numbers<[1], [0], [0], [1], [0, 0, 1, 1], [], []>} : vector<8x8xbf16>, vector<8x8xbf16>, vector<8x8xf32> -> vector<8x8xf32>
    %166 = vector.extract_strided_slice %142 {offsets = [0, 8], sizes = [8, 8], strides = [1, 1]} : vector<8x32xf32> to vector<8x8xf32>
    %167 = vector.extract_strided_slice %143 {offsets = [0, 8], sizes = [8, 8], strides = [1, 1]} : vector<8x32xf32> to vector<8x8xf32>
    %168 = vector.extract_strided_slice %144 {offsets = [0, 8], sizes = [8, 8], strides = [1, 1]} : vector<8x32xf32> to vector<8x8xf32>
    %169 = tpu.transpose %167, [1, 0] : vector<8x8xf32> -> vector<8x8xf32>
    %170 = arith.truncf %166 : vector<8x8xf32> to vector<8x8xbf16>
    %171 = arith.truncf %169 : vector<8x8xf32> to vector<8x8xbf16>
    %cst_41 = arith.constant dense<0.000000e+00> : vector<8x8xf32>
    %172 = tpu.matmul %170, %171, %cst_41 {dimension_numbers = #tpu.dot_dimension_numbers<[1], [0], [0], [1], [0, 0, 1, 1], [], []>} : vector<8x8xbf16>, vector<8x8xbf16>, vector<8x8xf32> -> vector<8x8xf32>
    %cst_42 = arith.constant 0.353553385 : f32
    %173 = vector.broadcast %cst_42 : f32 to vector<8x8xf32>
    %174 = arith.mulf %172, %173 : vector<8x8xf32>
    %cst_43 = arith.constant dense<0xFF800000> : vector<8xf32>
    %175 = vector.multi_reduction <maximumf>, %174, %cst_43 [1] : vector<8x8xf32> to vector<8xf32>
    %176 = vector.shape_cast %175 : vector<8xf32> to vector<8x1xf32>
    %177 = vector.broadcast %176 : vector<8x1xf32> to vector<8x8xf32>
    %178 = arith.subf %174, %177 : vector<8x8xf32>
    %179 = math.exp %178 : vector<8x8xf32>
    %cst_44 = arith.constant dense<0.000000e+00> : vector<8xf32>
    %180 = vector.multi_reduction <add>, %179, %cst_44 [1] : vector<8x8xf32> to vector<8xf32>
    %181 = vector.shape_cast %180 : vector<8xf32> to vector<8x1xf32>
    %182 = vector.broadcast %181 : vector<8x1xf32> to vector<8x8xf32>
    %183 = arith.divf %179, %182 : vector<8x8xf32>
    %184 = arith.truncf %183 : vector<8x8xf32> to vector<8x8xbf16>
    %185 = arith.truncf %168 : vector<8x8xf32> to vector<8x8xbf16>
    %cst_45 = arith.constant dense<0.000000e+00> : vector<8x8xf32>
    %186 = tpu.matmul %184, %185, %cst_45 {dimension_numbers = #tpu.dot_dimension_numbers<[1], [0], [0], [1], [0, 0, 1, 1], [], []>} : vector<8x8xbf16>, vector<8x8xbf16>, vector<8x8xf32> -> vector<8x8xf32>
    %187 = vector.extract_strided_slice %142 {offsets = [0, 16], sizes = [8, 8], strides = [1, 1]} : vector<8x32xf32> to vector<8x8xf32>
    %188 = vector.extract_strided_slice %143 {offsets = [0, 16], sizes = [8, 8], strides = [1, 1]} : vector<8x32xf32> to vector<8x8xf32>
    %189 = vector.extract_strided_slice %144 {offsets = [0, 16], sizes = [8, 8], strides = [1, 1]} : vector<8x32xf32> to vector<8x8xf32>
    %190 = tpu.transpose %188, [1, 0] : vector<8x8xf32> -> vector<8x8xf32>
    %191 = arith.truncf %187 : vector<8x8xf32> to vector<8x8xbf16>
    %192 = arith.truncf %190 : vector<8x8xf32> to vector<8x8xbf16>
    %cst_46 = arith.constant dense<0.000000e+00> : vector<8x8xf32>
    %193 = tpu.matmul %191, %192, %cst_46 {dimension_numbers = #tpu.dot_dimension_numbers<[1], [0], [0], [1], [0, 0, 1, 1], [], []>} : vector<8x8xbf16>, vector<8x8xbf16>, vector<8x8xf32> -> vector<8x8xf32>
    %cst_47 = arith.constant 0.353553385 : f32
    %194 = vector.broadcast %cst_47 : f32 to vector<8x8xf32>
    %195 = arith.mulf %193, %194 : vector<8x8xf32>
    %cst_48 = arith.constant dense<0xFF800000> : vector<8xf32>
    %196 = vector.multi_reduction <maximumf>, %195, %cst_48 [1] : vector<8x8xf32> to vector<8xf32>
    %197 = vector.shape_cast %196 : vector<8xf32> to vector<8x1xf32>
    %198 = vector.broadcast %197 : vector<8x1xf32> to vector<8x8xf32>
    %199 = arith.subf %195, %198 : vector<8x8xf32>
    %200 = math.exp %199 : vector<8x8xf32>
    %cst_49 = arith.constant dense<0.000000e+00> : vector<8xf32>
    %201 = vector.multi_reduction <add>, %200, %cst_49 [1] : vector<8x8xf32> to vector<8xf32>
    %202 = vector.shape_cast %201 : vector<8xf32> to vector<8x1xf32>
    %203 = vector.broadcast %202 : vector<8x1xf32> to vector<8x8xf32>
    %204 = arith.divf %200, %203 : vector<8x8xf32>
    %205 = arith.truncf %204 : vector<8x8xf32> to vector<8x8xbf16>
    %206 = arith.truncf %189 : vector<8x8xf32> to vector<8x8xbf16>
    %cst_50 = arith.constant dense<0.000000e+00> : vector<8x8xf32>
    %207 = tpu.matmul %205, %206, %cst_50 {dimension_numbers = #tpu.dot_dimension_numbers<[1], [0], [0], [1], [0, 0, 1, 1], [], []>} : vector<8x8xbf16>, vector<8x8xbf16>, vector<8x8xf32> -> vector<8x8xf32>
    %208 = vector.extract_strided_slice %142 {offsets = [0, 24], sizes = [8, 8], strides = [1, 1]} : vector<8x32xf32> to vector<8x8xf32>
    %209 = vector.extract_strided_slice %143 {offsets = [0, 24], sizes = [8, 8], strides = [1, 1]} : vector<8x32xf32> to vector<8x8xf32>
    %210 = vector.extract_strided_slice %144 {offsets = [0, 24], sizes = [8, 8], strides = [1, 1]} : vector<8x32xf32> to vector<8x8xf32>
    %211 = tpu.transpose %209, [1, 0] : vector<8x8xf32> -> vector<8x8xf32>
    %212 = arith.truncf %208 : vector<8x8xf32> to vector<8x8xbf16>
    %213 = arith.truncf %211 : vector<8x8xf32> to vector<8x8xbf16>
    %cst_51 = arith.constant dense<0.000000e+00> : vector<8x8xf32>
    %214 = tpu.matmul %212, %213, %cst_51 {dimension_numbers = #tpu.dot_dimension_numbers<[1], [0], [0], [1], [0, 0, 1, 1], [], []>} : vector<8x8xbf16>, vector<8x8xbf16>, vector<8x8xf32> -> vector<8x8xf32>
    %cst_52 = arith.constant 0.353553385 : f32
    %215 = vector.broadcast %cst_52 : f32 to vector<8x8xf32>
    %216 = arith.mulf %214, %215 : vector<8x8xf32>
    %cst_53 = arith.constant dense<0xFF800000> : vector<8xf32>
    %217 = vector.multi_reduction <maximumf>, %216, %cst_53 [1] : vector<8x8xf32> to vector<8xf32>
    %218 = vector.shape_cast %217 : vector<8xf32> to vector<8x1xf32>
    %219 = vector.broadcast %218 : vector<8x1xf32> to vector<8x8xf32>
    %220 = arith.subf %216, %219 : vector<8x8xf32>
    %221 = math.exp %220 : vector<8x8xf32>
    %cst_54 = arith.constant dense<0.000000e+00> : vector<8xf32>
    %222 = vector.multi_reduction <add>, %221, %cst_54 [1] : vector<8x8xf32> to vector<8xf32>
    %223 = vector.shape_cast %222 : vector<8xf32> to vector<8x1xf32>
    %224 = vector.broadcast %223 : vector<8x1xf32> to vector<8x8xf32>
    %225 = arith.divf %221, %224 : vector<8x8xf32>
    %226 = arith.truncf %225 : vector<8x8xf32> to vector<8x8xbf16>
    %227 = arith.truncf %210 : vector<8x8xf32> to vector<8x8xbf16>
    %cst_55 = arith.constant dense<0.000000e+00> : vector<8x8xf32>
    %228 = tpu.matmul %226, %227, %cst_55 {dimension_numbers = #tpu.dot_dimension_numbers<[1], [0], [0], [1], [0, 0, 1, 1], [], []>} : vector<8x8xbf16>, vector<8x8xbf16>, vector<8x8xf32> -> vector<8x8xf32>
    %229 = tpu.concatenate %165, %186, %207, %228 in 1 : vector<8x8xf32>, vector<8x8xf32>, vector<8x8xf32>, vector<8x8xf32> -> vector<8x32xf32>
    %230 = tpu.concatenate %141, %229 in 0 : vector<8x32xf32>, vector<8x32xf32> -> vector<16x32xf32>
    %231 = vector.extract_strided_slice %1 {offsets = [0, 96], sizes = [32, 32], strides = [1, 1]} : vector<32x320xbf16> to vector<32x32xbf16>
    %232 = arith.truncf %230 : vector<16x32xf32> to vector<16x32xbf16>
    %cst_56 = arith.constant dense<0.000000e+00> : vector<16x32xf32>
    %233 = tpu.matmul %232, %231, %cst_56 {dimension_numbers = #tpu.dot_dimension_numbers<[1], [0], [0], [1], [0, 0, 1, 1], [], []>} : vector<16x32xbf16>, vector<32x32xbf16>, vector<16x32xf32> -> vector<16x32xf32>
    %234 = vector.broadcast %15 : vector<1x32xf32> to vector<16x32xf32>
    %235 = arith.addf %233, %234 : vector<16x32xf32>
    %236 = arith.addf %0, %235 : vector<16x32xf32>
    %cst_57 = arith.constant dense<0.000000e+00> : vector<16xf32>
    %237 = vector.multi_reduction <add>, %0, %cst_57 [1] : vector<16x32xf32> to vector<16xf32>
    %238 = vector.shape_cast %237 : vector<16xf32> to vector<16x1xf32>
    %cst_58 = arith.constant 3.200000e+01 : f32
    %239 = vector.broadcast %cst_58 : f32 to vector<16x1xf32>
    %240 = arith.divf %238, %239 : vector<16x1xf32>
    %241 = vector.broadcast %240 : vector<16x1xf32> to vector<16x32xf32>
    %242 = arith.subf %0, %241 : vector<16x32xf32>
    %243 = arith.mulf %242, %242 : vector<16x32xf32>
    %cst_59 = arith.constant dense<0.000000e+00> : vector<16xf32>
    %244 = vector.multi_reduction <add>, %243, %cst_59 [1] : vector<16x32xf32> to vector<16xf32>
    %245 = vector.shape_cast %244 : vector<16xf32> to vector<16x1xf32>
    %cst_60 = arith.constant 3.100000e+01 : f32
    %246 = vector.broadcast %cst_60 : f32 to vector<16x1xf32>
    %247 = arith.divf %245, %246 : vector<16x1xf32>
    %248 = vector.broadcast %240 : vector<16x1xf32> to vector<16x32xf32>
    %249 = arith.subf %0, %248 : vector<16x32xf32>
    %250 = vector.broadcast %8 : vector<1x32xf32> to vector<16x32xf32>
    %251 = arith.mulf %250, %249 : vector<16x32xf32>
    %252 = math.sqrt %247 : vector<16x1xf32>
    %cst_61 = arith.constant 9.99999997E-7 : f32
    %253 = vector.broadcast %cst_61 : f32 to vector<16x1xf32>
    %254 = arith.addf %252, %253 : vector<16x1xf32>
    %255 = vector.broadcast %254 : vector<16x1xf32> to vector<16x32xf32>
    %256 = arith.divf %251, %255 : vector<16x32xf32>
    %257 = vector.broadcast %9 : vector<1x32xf32> to vector<16x32xf32>
    %258 = arith.addf %256, %257 : vector<16x32xf32>
    %259 = vector.extract_strided_slice %1 {offsets = [0, 128], sizes = [32, 32], strides = [1, 1]} : vector<32x320xbf16> to vector<32x32xbf16>
    %260 = arith.truncf %258 : vector<16x32xf32> to vector<16x32xbf16>
    %cst_62 = arith.constant dense<0.000000e+00> : vector<16x32xf32>
    %261 = tpu.matmul %260, %259, %cst_62 {dimension_numbers = #tpu.dot_dimension_numbers<[1], [0], [0], [1], [0, 0, 1, 1], [], []>} : vector<16x32xbf16>, vector<32x32xbf16>, vector<16x32xf32> -> vector<16x32xf32>
    %262 = vector.broadcast %16 : vector<1x32xf32> to vector<16x32xf32>
    %263 = arith.addf %261, %262 : vector<16x32xf32>
    %264 = vector.extract_strided_slice %1 {offsets = [0, 160], sizes = [32, 64], strides = [1, 1]} : vector<32x320xbf16> to vector<32x64xbf16>
    %265 = arith.truncf %236 : vector<16x32xf32> to vector<16x32xbf16>
    %cst_63 = arith.constant dense<0.000000e+00> : vector<16x64xf32>
    %266 = tpu.matmul %265, %264, %cst_63 {dimension_numbers = #tpu.dot_dimension_numbers<[1], [0], [0], [1], [0, 0, 1, 1], [], []>} : vector<16x32xbf16>, vector<32x64xbf16>, vector<16x64xf32> -> vector<16x64xf32>
    %267 = vector.extract_strided_slice %266 {offsets = [0, 0], sizes = [16, 32], strides = [1, 1]} : vector<16x64xf32> to vector<16x32xf32>
    %268 = vector.broadcast %17 : vector<1x32xf32> to vector<16x32xf32>
    %269 = arith.addf %267, %268 : vector<16x32xf32>
    %270 = vector.extract_strided_slice %266 {offsets = [0, 32], sizes = [16, 32], strides = [1, 1]} : vector<16x64xf32> to vector<16x32xf32>
    %271 = vector.broadcast %18 : vector<1x32xf32> to vector<16x32xf32>
    %272 = arith.addf %270, %271 : vector<16x32xf32>
    %273 = vector.extract_strided_slice %263 {offsets = [0, 0], sizes = [8, 32], strides = [1, 1]} : vector<16x32xf32> to vector<8x32xf32>
    %274 = vector.extract_strided_slice %269 {offsets = [0, 0], sizes = [8, 32], strides = [1, 1]} : vector<16x32xf32> to vector<8x32xf32>
    %275 = vector.extract_strided_slice %272 {offsets = [0, 0], sizes = [8, 32], strides = [1, 1]} : vector<16x32xf32> to vector<8x32xf32>
    %276 = vector.extract_strided_slice %273 {offsets = [0, 0], sizes = [8, 8], strides = [1, 1]} : vector<8x32xf32> to vector<8x8xf32>
    %277 = vector.extract_strided_slice %274 {offsets = [0, 0], sizes = [8, 8], strides = [1, 1]} : vector<8x32xf32> to vector<8x8xf32>
    %278 = vector.extract_strided_slice %275 {offsets = [0, 0], sizes = [8, 8], strides = [1, 1]} : vector<8x32xf32> to vector<8x8xf32>
    %279 = tpu.transpose %277, [1, 0] : vector<8x8xf32> -> vector<8x8xf32>
    %280 = arith.truncf %276 : vector<8x8xf32> to vector<8x8xbf16>
    %281 = arith.truncf %279 : vector<8x8xf32> to vector<8x8xbf16>
    %cst_64 = arith.constant dense<0.000000e+00> : vector<8x8xf32>
    %282 = tpu.matmul %280, %281, %cst_64 {dimension_numbers = #tpu.dot_dimension_numbers<[1], [0], [0], [1], [0, 0, 1, 1], [], []>} : vector<8x8xbf16>, vector<8x8xbf16>, vector<8x8xf32> -> vector<8x8xf32>
    %cst_65 = arith.constant 0.353553385 : f32
    %283 = vector.broadcast %cst_65 : f32 to vector<8x8xf32>
    %284 = arith.mulf %282, %283 : vector<8x8xf32>
    %cst_66 = arith.constant dense<0xFF800000> : vector<8xf32>
    %285 = vector.multi_reduction <maximumf>, %284, %cst_66 [1] : vector<8x8xf32> to vector<8xf32>
    %286 = vector.shape_cast %285 : vector<8xf32> to vector<8x1xf32>
    %287 = vector.broadcast %286 : vector<8x1xf32> to vector<8x8xf32>
    %288 = arith.subf %284, %287 : vector<8x8xf32>
    %289 = math.exp %288 : vector<8x8xf32>
    %cst_67 = arith.constant dense<0.000000e+00> : vector<8xf32>
    %290 = vector.multi_reduction <add>, %289, %cst_67 [1] : vector<8x8xf32> to vector<8xf32>
    %291 = vector.shape_cast %290 : vector<8xf32> to vector<8x1xf32>
    %292 = vector.broadcast %291 : vector<8x1xf32> to vector<8x8xf32>
    %293 = arith.divf %289, %292 : vector<8x8xf32>
    %294 = arith.truncf %293 : vector<8x8xf32> to vector<8x8xbf16>
    %295 = arith.truncf %278 : vector<8x8xf32> to vector<8x8xbf16>
    %cst_68 = arith.constant dense<0.000000e+00> : vector<8x8xf32>
    %296 = tpu.matmul %294, %295, %cst_68 {dimension_numbers = #tpu.dot_dimension_numbers<[1], [0], [0], [1], [0, 0, 1, 1], [], []>} : vector<8x8xbf16>, vector<8x8xbf16>, vector<8x8xf32> -> vector<8x8xf32>
    %297 = vector.extract_strided_slice %273 {offsets = [0, 8], sizes = [8, 8], strides = [1, 1]} : vector<8x32xf32> to vector<8x8xf32>
    %298 = vector.extract_strided_slice %274 {offsets = [0, 8], sizes = [8, 8], strides = [1, 1]} : vector<8x32xf32> to vector<8x8xf32>
    %299 = vector.extract_strided_slice %275 {offsets = [0, 8], sizes = [8, 8], strides = [1, 1]} : vector<8x32xf32> to vector<8x8xf32>
    %300 = tpu.transpose %298, [1, 0] : vector<8x8xf32> -> vector<8x8xf32>
    %301 = arith.truncf %297 : vector<8x8xf32> to vector<8x8xbf16>
    %302 = arith.truncf %300 : vector<8x8xf32> to vector<8x8xbf16>
    %cst_69 = arith.constant dense<0.000000e+00> : vector<8x8xf32>
    %303 = tpu.matmul %301, %302, %cst_69 {dimension_numbers = #tpu.dot_dimension_numbers<[1], [0], [0], [1], [0, 0, 1, 1], [], []>} : vector<8x8xbf16>, vector<8x8xbf16>, vector<8x8xf32> -> vector<8x8xf32>
    %cst_70 = arith.constant 0.353553385 : f32
    %304 = vector.broadcast %cst_70 : f32 to vector<8x8xf32>
    %305 = arith.mulf %303, %304 : vector<8x8xf32>
    %cst_71 = arith.constant dense<0xFF800000> : vector<8xf32>
    %306 = vector.multi_reduction <maximumf>, %305, %cst_71 [1] : vector<8x8xf32> to vector<8xf32>
    %307 = vector.shape_cast %306 : vector<8xf32> to vector<8x1xf32>
    %308 = vector.broadcast %307 : vector<8x1xf32> to vector<8x8xf32>
    %309 = arith.subf %305, %308 : vector<8x8xf32>
    %310 = math.exp %309 : vector<8x8xf32>
    %cst_72 = arith.constant dense<0.000000e+00> : vector<8xf32>
    %311 = vector.multi_reduction <add>, %310, %cst_72 [1] : vector<8x8xf32> to vector<8xf32>
    %312 = vector.shape_cast %311 : vector<8xf32> to vector<8x1xf32>
    %313 = vector.broadcast %312 : vector<8x1xf32> to vector<8x8xf32>
    %314 = arith.divf %310, %313 : vector<8x8xf32>
    %315 = arith.truncf %314 : vector<8x8xf32> to vector<8x8xbf16>
    %316 = arith.truncf %299 : vector<8x8xf32> to vector<8x8xbf16>
    %cst_73 = arith.constant dense<0.000000e+00> : vector<8x8xf32>
    %317 = tpu.matmul %315, %316, %cst_73 {dimension_numbers = #tpu.dot_dimension_numbers<[1], [0], [0], [1], [0, 0, 1, 1], [], []>} : vector<8x8xbf16>, vector<8x8xbf16>, vector<8x8xf32> -> vector<8x8xf32>
    %318 = vector.extract_strided_slice %273 {offsets = [0, 16], sizes = [8, 8], strides = [1, 1]} : vector<8x32xf32> to vector<8x8xf32>
    %319 = vector.extract_strided_slice %274 {offsets = [0, 16], sizes = [8, 8], strides = [1, 1]} : vector<8x32xf32> to vector<8x8xf32>
    %320 = vector.extract_strided_slice %275 {offsets = [0, 16], sizes = [8, 8], strides = [1, 1]} : vector<8x32xf32> to vector<8x8xf32>
    %321 = tpu.transpose %319, [1, 0] : vector<8x8xf32> -> vector<8x8xf32>
    %322 = arith.truncf %318 : vector<8x8xf32> to vector<8x8xbf16>
    %323 = arith.truncf %321 : vector<8x8xf32> to vector<8x8xbf16>
    %cst_74 = arith.constant dense<0.000000e+00> : vector<8x8xf32>
    %324 = tpu.matmul %322, %323, %cst_74 {dimension_numbers = #tpu.dot_dimension_numbers<[1], [0], [0], [1], [0, 0, 1, 1], [], []>} : vector<8x8xbf16>, vector<8x8xbf16>, vector<8x8xf32> -> vector<8x8xf32>
    %cst_75 = arith.constant 0.353553385 : f32
    %325 = vector.broadcast %cst_75 : f32 to vector<8x8xf32>
    %326 = arith.mulf %324, %325 : vector<8x8xf32>
    %cst_76 = arith.constant dense<0xFF800000> : vector<8xf32>
    %327 = vector.multi_reduction <maximumf>, %326, %cst_76 [1] : vector<8x8xf32> to vector<8xf32>
    %328 = vector.shape_cast %327 : vector<8xf32> to vector<8x1xf32>
    %329 = vector.broadcast %328 : vector<8x1xf32> to vector<8x8xf32>
    %330 = arith.subf %326, %329 : vector<8x8xf32>
    %331 = math.exp %330 : vector<8x8xf32>
    %cst_77 = arith.constant dense<0.000000e+00> : vector<8xf32>
    %332 = vector.multi_reduction <add>, %331, %cst_77 [1] : vector<8x8xf32> to vector<8xf32>
    %333 = vector.shape_cast %332 : vector<8xf32> to vector<8x1xf32>
    %334 = vector.broadcast %333 : vector<8x1xf32> to vector<8x8xf32>
    %335 = arith.divf %331, %334 : vector<8x8xf32>
    %336 = arith.truncf %335 : vector<8x8xf32> to vector<8x8xbf16>
    %337 = arith.truncf %320 : vector<8x8xf32> to vector<8x8xbf16>
    %cst_78 = arith.constant dense<0.000000e+00> : vector<8x8xf32>
    %338 = tpu.matmul %336, %337, %cst_78 {dimension_numbers = #tpu.dot_dimension_numbers<[1], [0], [0], [1], [0, 0, 1, 1], [], []>} : vector<8x8xbf16>, vector<8x8xbf16>, vector<8x8xf32> -> vector<8x8xf32>
    %339 = vector.extract_strided_slice %273 {offsets = [0, 24], sizes = [8, 8], strides = [1, 1]} : vector<8x32xf32> to vector<8x8xf32>
    %340 = vector.extract_strided_slice %274 {offsets = [0, 24], sizes = [8, 8], strides = [1, 1]} : vector<8x32xf32> to vector<8x8xf32>
    %341 = vector.extract_strided_slice %275 {offsets = [0, 24], sizes = [8, 8], strides = [1, 1]} : vector<8x32xf32> to vector<8x8xf32>
    %342 = tpu.transpose %340, [1, 0] : vector<8x8xf32> -> vector<8x8xf32>
    %343 = arith.truncf %339 : vector<8x8xf32> to vector<8x8xbf16>
    %344 = arith.truncf %342 : vector<8x8xf32> to vector<8x8xbf16>
    %cst_79 = arith.constant dense<0.000000e+00> : vector<8x8xf32>
    %345 = tpu.matmul %343, %344, %cst_79 {dimension_numbers = #tpu.dot_dimension_numbers<[1], [0], [0], [1], [0, 0, 1, 1], [], []>} : vector<8x8xbf16>, vector<8x8xbf16>, vector<8x8xf32> -> vector<8x8xf32>
    %cst_80 = arith.constant 0.353553385 : f32
    %346 = vector.broadcast %cst_80 : f32 to vector<8x8xf32>
    %347 = arith.mulf %345, %346 : vector<8x8xf32>
    %cst_81 = arith.constant dense<0xFF800000> : vector<8xf32>
    %348 = vector.multi_reduction <maximumf>, %347, %cst_81 [1] : vector<8x8xf32> to vector<8xf32>
    %349 = vector.shape_cast %348 : vector<8xf32> to vector<8x1xf32>
    %350 = vector.broadcast %349 : vector<8x1xf32> to vector<8x8xf32>
    %351 = arith.subf %347, %350 : vector<8x8xf32>
    %352 = math.exp %351 : vector<8x8xf32>
    %cst_82 = arith.constant dense<0.000000e+00> : vector<8xf32>
    %353 = vector.multi_reduction <add>, %352, %cst_82 [1] : vector<8x8xf32> to vector<8xf32>
    %354 = vector.shape_cast %353 : vector<8xf32> to vector<8x1xf32>
    %355 = vector.broadcast %354 : vector<8x1xf32> to vector<8x8xf32>
    %356 = arith.divf %352, %355 : vector<8x8xf32>
    %357 = arith.truncf %356 : vector<8x8xf32> to vector<8x8xbf16>
    %358 = arith.truncf %341 : vector<8x8xf32> to vector<8x8xbf16>
    %cst_83 = arith.constant dense<0.000000e+00> : vector<8x8xf32>
    %359 = tpu.matmul %357, %358, %cst_83 {dimension_numbers = #tpu.dot_dimension_numbers<[1], [0], [0], [1], [0, 0, 1, 1], [], []>} : vector<8x8xbf16>, vector<8x8xbf16>, vector<8x8xf32> -> vector<8x8xf32>
    %360 = tpu.concatenate %296, %317, %338, %359 in 1 : vector<8x8xf32>, vector<8x8xf32>, vector<8x8xf32>, vector<8x8xf32> -> vector<8x32xf32>
    %361 = vector.extract_strided_slice %263 {offsets = [8, 0], sizes = [8, 32], strides = [1, 1]} : vector<16x32xf32> to vector<8x32xf32>
    %362 = vector.extract_strided_slice %269 {offsets = [8, 0], sizes = [8, 32], strides = [1, 1]} : vector<16x32xf32> to vector<8x32xf32>
    %363 = vector.extract_strided_slice %272 {offsets = [8, 0], sizes = [8, 32], strides = [1, 1]} : vector<16x32xf32> to vector<8x32xf32>
    %364 = vector.extract_strided_slice %361 {offsets = [0, 0], sizes = [8, 8], strides = [1, 1]} : vector<8x32xf32> to vector<8x8xf32>
    %365 = vector.extract_strided_slice %362 {offsets = [0, 0], sizes = [8, 8], strides = [1, 1]} : vector<8x32xf32> to vector<8x8xf32>
    %366 = vector.extract_strided_slice %363 {offsets = [0, 0], sizes = [8, 8], strides = [1, 1]} : vector<8x32xf32> to vector<8x8xf32>
    %367 = tpu.transpose %365, [1, 0] : vector<8x8xf32> -> vector<8x8xf32>
    %368 = arith.truncf %364 : vector<8x8xf32> to vector<8x8xbf16>
    %369 = arith.truncf %367 : vector<8x8xf32> to vector<8x8xbf16>
    %cst_84 = arith.constant dense<0.000000e+00> : vector<8x8xf32>
    %370 = tpu.matmul %368, %369, %cst_84 {dimension_numbers = #tpu.dot_dimension_numbers<[1], [0], [0], [1], [0, 0, 1, 1], [], []>} : vector<8x8xbf16>, vector<8x8xbf16>, vector<8x8xf32> -> vector<8x8xf32>
    %cst_85 = arith.constant 0.353553385 : f32
    %371 = vector.broadcast %cst_85 : f32 to vector<8x8xf32>
    %372 = arith.mulf %370, %371 : vector<8x8xf32>
    %cst_86 = arith.constant dense<0xFF800000> : vector<8xf32>
    %373 = vector.multi_reduction <maximumf>, %372, %cst_86 [1] : vector<8x8xf32> to vector<8xf32>
    %374 = vector.shape_cast %373 : vector<8xf32> to vector<8x1xf32>
    %375 = vector.broadcast %374 : vector<8x1xf32> to vector<8x8xf32>
    %376 = arith.subf %372, %375 : vector<8x8xf32>
    %377 = math.exp %376 : vector<8x8xf32>
    %cst_87 = arith.constant dense<0.000000e+00> : vector<8xf32>
    %378 = vector.multi_reduction <add>, %377, %cst_87 [1] : vector<8x8xf32> to vector<8xf32>
    %379 = vector.shape_cast %378 : vector<8xf32> to vector<8x1xf32>
    %380 = vector.broadcast %379 : vector<8x1xf32> to vector<8x8xf32>
    %381 = arith.divf %377, %380 : vector<8x8xf32>
    %382 = arith.truncf %381 : vector<8x8xf32> to vector<8x8xbf16>
    %383 = arith.truncf %366 : vector<8x8xf32> to vector<8x8xbf16>
    %cst_88 = arith.constant dense<0.000000e+00> : vector<8x8xf32>
    %384 = tpu.matmul %382, %383, %cst_88 {dimension_numbers = #tpu.dot_dimension_numbers<[1], [0], [0], [1], [0, 0, 1, 1], [], []>} : vector<8x8xbf16>, vector<8x8xbf16>, vector<8x8xf32> -> vector<8x8xf32>
    %385 = vector.extract_strided_slice %361 {offsets = [0, 8], sizes = [8, 8], strides = [1, 1]} : vector<8x32xf32> to vector<8x8xf32>
    %386 = vector.extract_strided_slice %362 {offsets = [0, 8], sizes = [8, 8], strides = [1, 1]} : vector<8x32xf32> to vector<8x8xf32>
    %387 = vector.extract_strided_slice %363 {offsets = [0, 8], sizes = [8, 8], strides = [1, 1]} : vector<8x32xf32> to vector<8x8xf32>
    %388 = tpu.transpose %386, [1, 0] : vector<8x8xf32> -> vector<8x8xf32>
    %389 = arith.truncf %385 : vector<8x8xf32> to vector<8x8xbf16>
    %390 = arith.truncf %388 : vector<8x8xf32> to vector<8x8xbf16>
    %cst_89 = arith.constant dense<0.000000e+00> : vector<8x8xf32>
    %391 = tpu.matmul %389, %390, %cst_89 {dimension_numbers = #tpu.dot_dimension_numbers<[1], [0], [0], [1], [0, 0, 1, 1], [], []>} : vector<8x8xbf16>, vector<8x8xbf16>, vector<8x8xf32> -> vector<8x8xf32>
    %cst_90 = arith.constant 0.353553385 : f32
    %392 = vector.broadcast %cst_90 : f32 to vector<8x8xf32>
    %393 = arith.mulf %391, %392 : vector<8x8xf32>
    %cst_91 = arith.constant dense<0xFF800000> : vector<8xf32>
    %394 = vector.multi_reduction <maximumf>, %393, %cst_91 [1] : vector<8x8xf32> to vector<8xf32>
    %395 = vector.shape_cast %394 : vector<8xf32> to vector<8x1xf32>
    %396 = vector.broadcast %395 : vector<8x1xf32> to vector<8x8xf32>
    %397 = arith.subf %393, %396 : vector<8x8xf32>
    %398 = math.exp %397 : vector<8x8xf32>
    %cst_92 = arith.constant dense<0.000000e+00> : vector<8xf32>
    %399 = vector.multi_reduction <add>, %398, %cst_92 [1] : vector<8x8xf32> to vector<8xf32>
    %400 = vector.shape_cast %399 : vector<8xf32> to vector<8x1xf32>
    %401 = vector.broadcast %400 : vector<8x1xf32> to vector<8x8xf32>
    %402 = arith.divf %398, %401 : vector<8x8xf32>
    %403 = arith.truncf %402 : vector<8x8xf32> to vector<8x8xbf16>
    %404 = arith.truncf %387 : vector<8x8xf32> to vector<8x8xbf16>
    %cst_93 = arith.constant dense<0.000000e+00> : vector<8x8xf32>
    %405 = tpu.matmul %403, %404, %cst_93 {dimension_numbers = #tpu.dot_dimension_numbers<[1], [0], [0], [1], [0, 0, 1, 1], [], []>} : vector<8x8xbf16>, vector<8x8xbf16>, vector<8x8xf32> -> vector<8x8xf32>
    %406 = vector.extract_strided_slice %361 {offsets = [0, 16], sizes = [8, 8], strides = [1, 1]} : vector<8x32xf32> to vector<8x8xf32>
    %407 = vector.extract_strided_slice %362 {offsets = [0, 16], sizes = [8, 8], strides = [1, 1]} : vector<8x32xf32> to vector<8x8xf32>
    %408 = vector.extract_strided_slice %363 {offsets = [0, 16], sizes = [8, 8], strides = [1, 1]} : vector<8x32xf32> to vector<8x8xf32>
    %409 = tpu.transpose %407, [1, 0] : vector<8x8xf32> -> vector<8x8xf32>
    %410 = arith.truncf %406 : vector<8x8xf32> to vector<8x8xbf16>
    %411 = arith.truncf %409 : vector<8x8xf32> to vector<8x8xbf16>
    %cst_94 = arith.constant dense<0.000000e+00> : vector<8x8xf32>
    %412 = tpu.matmul %410, %411, %cst_94 {dimension_numbers = #tpu.dot_dimension_numbers<[1], [0], [0], [1], [0, 0, 1, 1], [], []>} : vector<8x8xbf16>, vector<8x8xbf16>, vector<8x8xf32> -> vector<8x8xf32>
    %cst_95 = arith.constant 0.353553385 : f32
    %413 = vector.broadcast %cst_95 : f32 to vector<8x8xf32>
    %414 = arith.mulf %412, %413 : vector<8x8xf32>
    %cst_96 = arith.constant dense<0xFF800000> : vector<8xf32>
    %415 = vector.multi_reduction <maximumf>, %414, %cst_96 [1] : vector<8x8xf32> to vector<8xf32>
    %416 = vector.shape_cast %415 : vector<8xf32> to vector<8x1xf32>
    %417 = vector.broadcast %416 : vector<8x1xf32> to vector<8x8xf32>
    %418 = arith.subf %414, %417 : vector<8x8xf32>
    %419 = math.exp %418 : vector<8x8xf32>
    %cst_97 = arith.constant dense<0.000000e+00> : vector<8xf32>
    %420 = vector.multi_reduction <add>, %419, %cst_97 [1] : vector<8x8xf32> to vector<8xf32>
    %421 = vector.shape_cast %420 : vector<8xf32> to vector<8x1xf32>
    %422 = vector.broadcast %421 : vector<8x1xf32> to vector<8x8xf32>
    %423 = arith.divf %419, %422 : vector<8x8xf32>
    %424 = arith.truncf %423 : vector<8x8xf32> to vector<8x8xbf16>
    %425 = arith.truncf %408 : vector<8x8xf32> to vector<8x8xbf16>
    %cst_98 = arith.constant dense<0.000000e+00> : vector<8x8xf32>
    %426 = tpu.matmul %424, %425, %cst_98 {dimension_numbers = #tpu.dot_dimension_numbers<[1], [0], [0], [1], [0, 0, 1, 1], [], []>} : vector<8x8xbf16>, vector<8x8xbf16>, vector<8x8xf32> -> vector<8x8xf32>
    %427 = vector.extract_strided_slice %361 {offsets = [0, 24], sizes = [8, 8], strides = [1, 1]} : vector<8x32xf32> to vector<8x8xf32>
    %428 = vector.extract_strided_slice %362 {offsets = [0, 24], sizes = [8, 8], strides = [1, 1]} : vector<8x32xf32> to vector<8x8xf32>
    %429 = vector.extract_strided_slice %363 {offsets = [0, 24], sizes = [8, 8], strides = [1, 1]} : vector<8x32xf32> to vector<8x8xf32>
    %430 = tpu.transpose %428, [1, 0] : vector<8x8xf32> -> vector<8x8xf32>
    %431 = arith.truncf %427 : vector<8x8xf32> to vector<8x8xbf16>
    %432 = arith.truncf %430 : vector<8x8xf32> to vector<8x8xbf16>
    %cst_99 = arith.constant dense<0.000000e+00> : vector<8x8xf32>
    %433 = tpu.matmul %431, %432, %cst_99 {dimension_numbers = #tpu.dot_dimension_numbers<[1], [0], [0], [1], [0, 0, 1, 1], [], []>} : vector<8x8xbf16>, vector<8x8xbf16>, vector<8x8xf32> -> vector<8x8xf32>
    %cst_100 = arith.constant 0.353553385 : f32
    %434 = vector.broadcast %cst_100 : f32 to vector<8x8xf32>
    %435 = arith.mulf %433, %434 : vector<8x8xf32>
    %cst_101 = arith.constant dense<0xFF800000> : vector<8xf32>
    %436 = vector.multi_reduction <maximumf>, %435, %cst_101 [1] : vector<8x8xf32> to vector<8xf32>
    %437 = vector.shape_cast %436 : vector<8xf32> to vector<8x1xf32>
    %438 = vector.broadcast %437 : vector<8x1xf32> to vector<8x8xf32>
    %439 = arith.subf %435, %438 : vector<8x8xf32>
    %440 = math.exp %439 : vector<8x8xf32>
    %cst_102 = arith.constant dense<0.000000e+00> : vector<8xf32>
    %441 = vector.multi_reduction <add>, %440, %cst_102 [1] : vector<8x8xf32> to vector<8xf32>
    %442 = vector.shape_cast %441 : vector<8xf32> to vector<8x1xf32>
    %443 = vector.broadcast %442 : vector<8x1xf32> to vector<8x8xf32>
    %444 = arith.divf %440, %443 : vector<8x8xf32>
    %445 = arith.truncf %444 : vector<8x8xf32> to vector<8x8xbf16>
    %446 = arith.truncf %429 : vector<8x8xf32> to vector<8x8xbf16>
    %cst_103 = arith.constant dense<0.000000e+00> : vector<8x8xf32>
    %447 = tpu.matmul %445, %446, %cst_103 {dimension_numbers = #tpu.dot_dimension_numbers<[1], [0], [0], [1], [0, 0, 1, 1], [], []>} : vector<8x8xbf16>, vector<8x8xbf16>, vector<8x8xf32> -> vector<8x8xf32>
    %448 = tpu.concatenate %384, %405, %426, %447 in 1 : vector<8x8xf32>, vector<8x8xf32>, vector<8x8xf32>, vector<8x8xf32> -> vector<8x32xf32>
    %449 = tpu.concatenate %360, %448 in 0 : vector<8x32xf32>, vector<8x32xf32> -> vector<16x32xf32>
    %450 = vector.extract_strided_slice %1 {offsets = [0, 224], sizes = [32, 32], strides = [1, 1]} : vector<32x320xbf16> to vector<32x32xbf16>
    %451 = arith.truncf %449 : vector<16x32xf32> to vector<16x32xbf16>
    %cst_104 = arith.constant dense<0.000000e+00> : vector<16x32xf32>
    %452 = tpu.matmul %451, %450, %cst_104 {dimension_numbers = #tpu.dot_dimension_numbers<[1], [0], [0], [1], [0, 0, 1, 1], [], []>} : vector<16x32xbf16>, vector<32x32xbf16>, vector<16x32xf32> -> vector<16x32xf32>
    %453 = vector.broadcast %19 : vector<1x32xf32> to vector<16x32xf32>
    %454 = arith.addf %452, %453 : vector<16x32xf32>
    %455 = arith.addf %0, %454 : vector<16x32xf32>
    %cst_105 = arith.constant dense<0.000000e+00> : vector<16xf32>
    %456 = vector.multi_reduction <add>, %455, %cst_105 [1] : vector<16x32xf32> to vector<16xf32>
    %457 = vector.shape_cast %456 : vector<16xf32> to vector<16x1xf32>
    %cst_106 = arith.constant 3.200000e+01 : f32
    %458 = vector.broadcast %cst_106 : f32 to vector<16x1xf32>
    %459 = arith.divf %457, %458 : vector<16x1xf32>
    %460 = vector.broadcast %459 : vector<16x1xf32> to vector<16x32xf32>
    %461 = arith.subf %455, %460 : vector<16x32xf32>
    %462 = arith.mulf %461, %461 : vector<16x32xf32>
    %cst_107 = arith.constant dense<0.000000e+00> : vector<16xf32>
    %463 = vector.multi_reduction <add>, %462, %cst_107 [1] : vector<16x32xf32> to vector<16xf32>
    %464 = vector.shape_cast %463 : vector<16xf32> to vector<16x1xf32>
    %cst_108 = arith.constant 3.100000e+01 : f32
    %465 = vector.broadcast %cst_108 : f32 to vector<16x1xf32>
    %466 = arith.divf %464, %465 : vector<16x1xf32>
    %467 = vector.broadcast %459 : vector<16x1xf32> to vector<16x32xf32>
    %468 = arith.subf %455, %467 : vector<16x32xf32>
    %469 = vector.broadcast %10 : vector<1x32xf32> to vector<16x32xf32>
    %470 = arith.mulf %469, %468 : vector<16x32xf32>
    %471 = math.sqrt %466 : vector<16x1xf32>
    %cst_109 = arith.constant 9.99999997E-7 : f32
    %472 = vector.broadcast %cst_109 : f32 to vector<16x1xf32>
    %473 = arith.addf %471, %472 : vector<16x1xf32>
    %474 = vector.broadcast %473 : vector<16x1xf32> to vector<16x32xf32>
    %475 = arith.divf %470, %474 : vector<16x32xf32>
    %476 = vector.broadcast %11 : vector<1x32xf32> to vector<16x32xf32>
    %477 = arith.addf %475, %476 : vector<16x32xf32>
    %478 = vector.extract_strided_slice %1 {offsets = [0, 256], sizes = [32, 64], strides = [1, 1]} : vector<32x320xbf16> to vector<32x64xbf16>
    %479 = arith.truncf %477 : vector<16x32xf32> to vector<16x32xbf16>
    %cst_110 = arith.constant dense<0.000000e+00> : vector<16x64xf32>
    %480 = tpu.matmul %479, %478, %cst_110 {dimension_numbers = #tpu.dot_dimension_numbers<[1], [0], [0], [1], [0, 0, 1, 1], [], []>} : vector<16x32xbf16>, vector<32x64xbf16>, vector<16x64xf32> -> vector<16x64xf32>
    %481 = vector.broadcast %4 : vector<1x64xf32> to vector<16x64xf32>
    %482 = arith.addf %480, %481 : vector<16x64xf32>
    %cst_111 = arith.constant 0.000000e+00 : f32
    %483 = vector.broadcast %cst_111 : f32 to vector<16x64xf32>
    %484 = arith.maximumf %482, %483 : vector<16x64xf32>
    %485 = arith.truncf %484 : vector<16x64xf32> to vector<16x64xbf16>
    %cst_112 = arith.constant dense<0.000000e+00> : vector<16x32xf32>
    %486 = tpu.matmul %485, %2, %cst_112 {dimension_numbers = #tpu.dot_dimension_numbers<[1], [0], [0], [1], [0, 0, 1, 1], [], []>} : vector<16x64xbf16>, vector<64x32xbf16>, vector<16x32xf32> -> vector<16x32xf32>
    %487 = vector.broadcast %5 : vector<1x32xf32> to vector<16x32xf32>
    %488 = arith.addf %486, %487 : vector<16x32xf32>
    %c0_113 = arith.constant 0 : index
    %c0_114 = arith.constant 0 : index
    %489 = vector.load %arg7[%c0_113, %c0_114] : memref<16x32xf32, #tpu.memory_space<vmem>>, vector<16x32xf32>
    tpu.vector_store %arg7[%c0_113, %c0_114], %488 {strides = array<i32>} : memref<16x32xf32, #tpu.memory_space<vmem>>, vector<16x32xf32>,
    return
  }
  func.func @transform_0(%arg0: i32) -> (i32, i32) {
    %c0_i32 = arith.constant 0 : i32
    %c0_i32_0 = arith.constant 0 : i32
    %c0_i32_1 = arith.constant 0 : i32
    return %c0_i32, %c0_i32_0 : i32, i32
  }
  func.func @transform_1(%arg0: i32) -> (i32, i32) {
    %c0_i32 = arith.constant 0 : i32
    %c0_i32_0 = arith.constant 0 : i32
    %c0_i32_1 = arith.constant 0 : i32
    return %c0_i32, %c0_i32_0 : i32, i32
  }
  func.func @transform_2(%arg0: i32) -> (i32, i32) {
    %c0_i32 = arith.constant 0 : i32
    %c0_i32_0 = arith.constant 0 : i32
    %c0_i32_1 = arith.constant 0 : i32
    return %c0_i32, %c0_i32_0 : i32, i32
  }
  func.func @transform_3(%arg0: i32) -> (i32, i32) {
    %c0_i32 = arith.constant 0 : i32
    %c0_i32_0 = arith.constant 0 : i32
    %c0_i32_1 = arith.constant 0 : i32
    return %c0_i32, %c0_i32_0 : i32, i32
  }
  func.func @transform_4(%arg0: i32) -> (i32, i32) {
    %c0_i32 = arith.constant 0 : i32
    %c0_i32_0 = arith.constant 0 : i32
    %c0_i32_1 = arith.constant 0 : i32
    return %c0_i32, %c0_i32_0 : i32, i32
  }
  func.func @transform_5(%arg0: i32) -> (i32, i32) {
    %c0_i32 = arith.constant 0 : i32
    %c0_i32_0 = arith.constant 0 : i32
    %c0_i32_1 = arith.constant 0 : i32
    return %c0_i32, %c0_i32_0 : i32, i32
  }
  func.func @transform_6(%arg0: i32) -> (i32, i32) {
    %c0_i32 = arith.constant 0 : i32
    %c0_i32_0 = arith.constant 0 : i32
    %c0_i32_1 = arith.constant 0 : i32
    return %c0_i32, %c0_i32_0 : i32, i32
  }
}

</mosaic_0001>

<bundles_post_ra>
// kernel: my_attention.1
= control target key start
LH: loop header
LB: loop body
LE: loop exit
PB: predicated region body
PF: predicated region fallthrough
CT: control target
= control target key end

     0   :  { %vm47_vm0 = vcmask 261120   ;;  %s4298_s0 = inlined_call_operand.vmem [shape: f32[16,32], index: 0, kind: input, shape index: {}]   ;;  %s4299_s1 = inlined_call_operand.vmem [shape: bf16[32,320], index: 1, kind: input, shape index: {}]   ;;  %s4300_s2 = inlined_call_operand.vmem [shape: bf16[64,32], index: 2, kind: input, shape index: {}]   ;;  %s4301_s3 = inlined_call_operand.vmem [shape: f32[14,32], index: 3, kind: input, shape index: {}]   ;;  %s4302_s4 = inlined_call_operand.vmem [shape: f32[1,64], index: 4, kind: input, shape index: {}]   ;;  %s4303_s5 = inlined_call_operand.vmem [shape: f32[1,32], index: 5, kind: input, shape index: {}]   ;;  %s4304_s6 = inlined_call_operand.hbm [shape: f32[16,32], index: 6, kind: output, shape index: {}]  }
   0x1   :  { %v25_v0 = vld [vmem:[%s4298_s0] sm:$0xff]  ;;  %v26_v1 = vld [vmem:[%s4298_s0 + $0x8] sm:$0xff] }
   0x2   :  { %v48_v2 = vsel %vm47_vm0, %v25_v0, 0.0  ;;  %v51_v3 = vsel %vm47_vm0, %v26_v1, 0.0 }
   0x3   :  { %49 = vadd.xlane.f32.xlu0 %v48_v2 }
   0x7   :  { %52 = vadd.xlane.f32.xlu0 %v51_v3 }
   0x8   :  { %11 = vsyncpa [#allocation3], 0  ;;  %v3739_v14 = vld [vmem:[%s4299_s1 + $0x18] ss:$12 sps:$4 sm:$0xff]   ;;  %v3672_v15 = vmov 0.0   ;;  %vm3673_vm1 = vmmov 0   ;;  %v70_v17 = vlaneseq }
   0x9   :  { %3176 = vmatprep.subr.bf16.mxu0 %v3672_v15  ;;  %3180 = vmatprep.mubr.msk.bf16.mxu0 %vm3673_vm1, %v3672_v15  ;;  %v3748_v16 = vld [vmem:[%s4299_s1] ss:$12 sps:$4 sm:$0xff]   ;;  %s3674_s7 = smov 32   ;;  %s3675_s8 = smov 112   ;;  %vm227_vm6 = vcmask 1043456   ;;  %vm223_vm7 = vcmask 64512  }
   0xa   :  { %3177 = vmatpush3.bf16.msra.mxu0 %v3739_v14  ;;  %3190 = vmatprep.subr.bf16.mxu1 %v3672_v15  ;;  %v3756_v18 = vshrl.u32 %v70_v17, 7  ;;  %v43_v20 = vld [vmem:[%s4301_s3] sm:$0xff]  ;;  %s3676_s9 = smov 120   ;;  %s3677_s10 = smov 104   ;;  %vm783_vm8 = vcmask 130048   ;;  %vm785_vm9 = vcmask 195584  }
   0xb   :  { %3178 = vmatprep.subr.bf16.mxu0 %v3672_v15  ;;  %3192 = vmatprep.mubr.msk.bf16.mxu1 %vm3673_vm1, %v3672_v15  ;;  %s3678_s11 = smov 96   ;;  %s3679_s12 = smov 72   ;;  %vm2975_vm14 = vcmask 523264  }
   0xc   :  { %v167_v19 = vsub.s32 7, %v3756_v18  ;;  %v1444_v38 = vsub.s32 2, %v3756_v18  ;;  %v72_v39 = vsub.s32 0, %v3756_v18  ;;  %v98_v43 = vsub.s32 1, %v3756_v18  ;;  %s3680_s13 = smov 88   ;;  %s3681_s14 = smov 80  }
   0xd   :  { %v1452_v44 = vsub.s32 3, %v3756_v18  ;;  %v161_v62 = vsub.s32 6, %v3756_v18  ;;  %s3682_s17 = smov 64   ;;  %s3683_s18 = smov 56  }
   0xe   :  { %3179 = vmatpush3.bf16.msra.mxu0 %v3748_v16  ;;  %v168_v21 = vrot.slane %v43_v20, %v167_v19  ;;  %v1445_v40 = vrot.slane %v43_v20, %v1444_v38  ;;  %v73_v41 = vrot.slane %v43_v20, %v72_v39  ;;  %v99_v51 = vrot.slane %v43_v20, %v98_v43  ;;  %s3684_s19 = smov 48   ;;  %s3685_s20 = smov 40  }
   0xf   :  { %3184 = vmatprep.subr.bf16.mxu0 %v3672_v15  ;;  %v1453_v52 = vrot.slane %v43_v20, %v1452_v44  ;;  %v162_v63 = vrot.slane %v43_v20, %v161_v62  ;;  %s3686_s25 = smov 8   ;;  %s3687_s26 = smov 16  }
  0x10   :  { %s3688_s27 = smov 24  }
  0x1d   :  { %170 = vrot.lane.b32.xlu0 %v168_v21, %s3674_s7 }
  0x8c   :  { %v50_v4 = vpop.xlane.xlu0 %49 }
  0x8d   :  { %v55_v5 = vmul.f32 0.03125, %v50_v4 }
  0x8f   :  { %v57_v6 = vsub.f32 %v25_v0, %v55_v5 }
  0x90   :  { %v53_v7 = vpop.xlane.xlu0 %52 }
  0x91   :  { %v56_v8 = vmul.f32 0.03125, %v53_v7  ;;  %v59_v9 = vmul.f32 %v57_v6, %v57_v6  ;;  %v1446_v42 = vmul.f32 %v1445_v40, %v57_v6  ;;  %v74_v46 = vmul.f32 %v73_v41, %v57_v6 }
  0x93   :  { %v58_v10 = vsub.f32 %v26_v1, %v56_v8  ;;  %v61_v11 = vsel %vm47_vm0, %v59_v9, 0.0 }
  0x94   :  { %62 = vadd.xlane.f32.xlu1 %v61_v11  ;;  %v171_v2 = vpop.permute.xlu0 %170 }
  0x95   :  { %v60_v12 = vmul.f32 %v58_v10, %v58_v10  ;;  %v75_v48 = vmul.f32 %v73_v41, %v58_v10  ;;  %v1447_v49 = vmul.f32 %v1445_v40, %v58_v10 }
  0x97   :  { %v64_v13 = vsel %vm47_vm0, %v60_v12, 0.0 }
  0x98   :  { %65 = vadd.xlane.f32.xlu1 %v64_v13 }
 0x11d   :  { %v63_v22 = vpop.xlane.xlu1 %62 }
 0x11e   :  { %v68_v23 = vmul.f32 0.032258064, %v63_v22 }
 0x120   :  { %3566 = vrsqrt.f32 %v68_v23  ;;  %vm78_vm2 = vcmp.eq.f32.partialorder %v68_v23, inf  ;;  %v81_v28 = vand.u32 2147483648, %v68_v23  ;;  %vm80_vm3 = vcmp.eq.f32.partialorder %v68_v23, 0.0 }
 0x121   :  { %v66_v24 = vpop.xlane.xlu1 %65 }
 0x122   :  { %v69_v25 = vmul.f32 0.032258064, %v66_v24 }
 0x124   :  { %3568 = vrsqrt.f32 %v69_v25  ;;  %vm85_vm4 = vcmp.eq.f32.partialorder %v69_v25, inf  ;;  %v88_v34 = vand.u32 2147483648, %v69_v25  ;;  %vm87_vm5 = vcmp.eq.f32.partialorder %v69_v25, 0.0 }
 0x12d   :  { %v3567_v26 = vpop.eup %3566 }
 0x12e   :  { %v77_v27 = vmul.f32 %v3567_v26, %v68_v23 }
 0x130   :  { %v79_v29 = vsel %vm78_vm2, %v68_v23, %v77_v27 }
 0x131   :  { %v3569_v30 = vpop.eup %3568  ;;  %v82_v31 = vsel %vm80_vm3, %v81_v28, %v79_v29 }
 0x132   :  { %v90_v32 = vadd.f32 1e-06, %v82_v31  ;;  %v84_v33 = vmul.f32 %v3569_v30, %v69_v25 }
 0x134   :  { %3570 = vrcp.f32 %v90_v32  ;;  %v86_v35 = vsel %vm85_vm4, %v69_v25, %v84_v33 }
 0x135   :  { %v89_v36 = vsel %vm87_vm5, %v88_v34, %v86_v35 }
 0x136   :  { %v91_v37 = vadd.f32 1e-06, %v89_v36 }
 0x138   :  { %3572 = vrcp.f32 %v91_v37 }
 0x141   :  { %v3571_v45 = vpop.eup %3570 }
 0x142   :  { %v1448_v47 = vmul.f32 %v3571_v45, %v1446_v42  ;;  %v93_v50 = vmul.f32 %v3571_v45, %v74_v46 }
 0x144   :  { %v100_v56 = vadd.f32 %v99_v51, %v93_v50  ;;  %v3775_v58 = vadd.f32 %v1453_v52, %v1448_v47 }
 0x145   :  { %v3573_v53 = vpop.eup %3572 }
 0x146   :  { %v95_v54 = vmul.f32 %v3573_v53, %v75_v48  ;;  %v1449_v55 = vmul.f32 %v3573_v53, %v1447_v49 }
 0x148   :  { %v101_v57 = vadd.f32 %v99_v51, %v95_v54  ;;  %v3777_v59 = vadd.f32 %v1453_v52, %v1449_v55 }
 0x14a   :  { %v102_v60 = vpack.c.bf16 %v101_v57, %v100_v56  ;;  %v1456_v61 = vpack.c.bf16 %v3777_v59, %v3775_v58 }
 0x14c   :  { %3181 = vmatmul.mubr.msk.bf16.vlgmr.msra.gmra.mxu0 %vm47_vm0, %v102_v60 }
 0x14d   :  { %3186 = vmatprep.mubr.msk.bf16.mxu0 %vm3673_vm1, %v3672_v15 }
 0x20c   :  { %v3785_v0 = vpop.f32.mrf.mxu0 }
 0x20d   :  { %v163_v1 = vadd.f32 %v162_v63, %v3785_v0  ;;  %v173_v6 = vadd.f32 %v171_v2, %v3785_v0 }
 0x20e   :  { %v3182_v3 = vpop.f32.mrf.mxu0 }
 0x20f   :  { %v221_v4 = vpack.c.bf16 %v163_v1, %v163_v1 }
 0x210   :  { %v3788_v5 = vpop.f32.mrf.mxu0 }
 0x211   :  { %v174_v7 = vadd.f32 %v171_v2, %v3788_v5  ;;  %516 = vrot.lane.b32.xlu0 %v221_v4, %s3675_s8  ;;  %371 = vrot.lane.b32.xlu1 %v221_v4, %s3676_s9  ;;  %v164_v10 = vadd.f32 %v162_v63, %v3788_v5 }
 0x212   :  { %v3183_v8 = vpop.f32.mrf.mxu0 }
 0x213   :  { %v3447_v9 = vpack.i.bf16 %v174_v7, %v173_v6  ;;  %v3799_v11 = vpack.c.bf16 %v164_v10, %v164_v10 }
 0x215   :  { %661 = vrot.lane.b32.xlu0 %v221_v4, %s3677_s10  ;;  %3448 = vrot.lane.b32.xlu1 %v3447_v9, %s3678_s11 }
 0x219   :  { %3463 = vrot.lane.b32.xlu0 %v3447_v9, %s3679_s12  ;;  %3453 = vrot.lane.b32.xlu1 %v3447_v9, %s3680_s13 }
 0x21d   :  { %971 = vrot.lane.b32.xlu0 %v3799_v11, %s3676_s9  ;;  %3458 = vrot.lane.b32.xlu1 %v3447_v9, %s3681_s14 }
 0x283   :  { %v372_v12 = vpop.permute.xlu1 %371  ;;  %v517_v13 = vpop.permute.xlu0 %516 }
 0x287   :  { %v3449_v17 = vpop.permute.xlu1 %3448  ;;  %v662_v19 = vpop.permute.xlu0 %661 }
 0x288   :  { %v3451_v21 = vunpack.i.h.bf16 %v3449_v17  ;;  %v3450_v22 = vunpack.i.l.bf16 %v3449_v17 }
 0x28b   :  { %v3454_v20 = vpop.permute.xlu1 %3453  ;;  %v3464_v25 = vpop.permute.xlu0 %3463 }
 0x28c   :  { %v3456_v23 = vunpack.i.h.bf16 %v3454_v20  ;;  %v3455_v24 = vunpack.i.l.bf16 %v3454_v20  ;;  %v3465_v30 = vunpack.i.l.bf16 %v3464_v25  ;;  %v3466_v33 = vunpack.i.h.bf16 %v3464_v25 }
 0x28e   :  { %v3481_v26 = vpack.i.bf16 %v3456_v23, %v3451_v21  ;;  %v3467_v27 = vpack.i.bf16 %v3455_v24, %v3450_v22 }
 0x28f   :  { %v3459_v28 = vpop.permute.xlu1 %3458  ;;  %v972_v34 = vpop.permute.xlu0 %971 }
 0x290   :  { %v3460_v29 = vunpack.i.l.bf16 %v3459_v28  ;;  %3468 = vxpose.xlu1.b32.start.end [1/1] (short) (narrow) %v3467_v27, 8  ;;  %v3461_v32 = vunpack.i.h.bf16 %v3459_v28 }
 0x292   :  { %v3474_v31 = vpack.i.bf16 %v3465_v30, %v3460_v29 }
 0x294   :  { %3475 = vxpose.xlu0.b32.start.end [1/1] (short) (narrow) %v3474_v31, 8 }
 0x2ae   :  { %1116 = vrot.lane.b32.xlu1 %v3799_v11, %s3675_s8 }
 0x2bd   :  { %1261 = vrot.lane.b32.xlu0 %v3799_v11, %s3677_s10 }
 0x2d7   :  { %3482 = vxpose.xlu1.b32.start.end [1/1] (short) (narrow) %v3481_v26, 8 }
 0x2db   :  { %1083 = vxpose.xlu0.b32.start.end [1/1] (short) (narrow) %v3461_v32, 8 }
 0x2df   :  { %1228 = vxpose.xlu0.b32.start.end [1/1] (short) (narrow) %v3466_v33, 8 }
 0x30c   :  { %v3469_v35 = vpop.trf.xlu1 }
 0x30d   :  { %v3473_v36 = vunpack.i.h.bf16 %v3469_v35  ;;  %v3470_v37 = vunpack.i.l.bf16 %v3469_v35 }
 0x30f   :  { %v222_v40 = vpack.c.bf16 %v3470_v37, %v3470_v37  ;;  %v369_v45 = vpack.c.bf16 %v3473_v36, %v3473_v36  ;;  %v3862_v37 = vld [vmem:[%s4301_s3 + $0x8] sm:$0x3f] }
 0x310   :  { %v3476_v41 = vpop.trf.xlu0 }
 0x311   :  { %v229_v42 = vsel %vm227_vm6, %v222_v40, 0  ;;  %v3477_v46 = vunpack.i.l.bf16 %v3476_v41  ;;  %v377_v47 = vsel %vm227_vm6, %v369_v45, 0  ;;  %v3480_v50 = vunpack.i.h.bf16 %v3476_v41 }
 0x312   :  { %3185 = vmatpush3.bf16.msra.mxu0 %v229_v42  ;;  %v178_v40 = vrot.slane %v3862_v37, %v72_v39 }
 0x313   :  { %3196 = vmatprep.subr.bf16.mxu0 %v3672_v15  ;;  %v515_v48 = vpack.c.bf16 %v3477_v46, %v3477_v46  ;;  %v660_v51 = vpack.c.bf16 %v3480_v50, %v3480_v50 }
 0x315   :  { %3187 = vmatmul.mubr.msk.bf16.vlgmr.msra.gmra.mxu0 %vm223_vm7, %v221_v4  ;;  %v522_v49 = vsel %vm227_vm6, %v515_v48, 0  ;;  %v667_v52 = vsel %vm227_vm6, %v660_v51, 0 }
 0x316   :  { %3197 = vmatpush3.bf16.msra.mxu0 %v377_v47  ;;  %3198 = vmatprep.mubr.msk.bf16.mxu0 %vm3673_vm1, %v3672_v15 }
 0x317   :  { %3208 = vmatprep.subr.bf16.mxu0 %v3672_v15 }
 0x31d   :  { %3199 = vmatmul.mubr.msk.bf16.vlgmr.msra.gmra.mxu0 %vm223_vm7, %v372_v12 }
 0x31e   :  { %3209 = vmatpush3.bf16.msra.mxu0 %v522_v49  ;;  %3210 = vmatprep.mubr.msk.bf16.mxu0 %vm3673_vm1, %v3672_v15 }
 0x31f   :  { %3220 = vmatprep.subr.bf16.mxu0 %v3672_v15 }
 0x320   :  { %v1117_v53 = vpop.permute.xlu1 %1116 }
 0x325   :  { %3211 = vmatmul.mubr.msk.bf16.vlgmr.msra.gmra.mxu0 %vm223_vm7, %v517_v13 }
 0x326   :  { %3221 = vmatpush3.bf16.msra.mxu0 %v667_v52  ;;  %3222 = vmatprep.mubr.msk.bf16.mxu0 %vm3673_vm1, %v3672_v15 }
 0x327   :  { %3232 = vmatprep.subr.bf16.mxu0 %v3672_v15 }
 0x32d   :  { %3223 = vmatmul.mubr.msk.bf16.vlgmr.msra.gmra.mxu0 %vm223_vm7, %v662_v19 }
 0x32e   :  { %3234 = vmatprep.mubr.msk.bf16.mxu0 %vm3673_vm1, %v3672_v15 }
 0x32f   :  { %v1262_v62 = vpop.permute.xlu0 %1261 }
 0x353   :  { %v3483_v54 = vpop.trf.xlu1 }
 0x354   :  { %v3487_v55 = vunpack.i.h.bf16 %v3483_v54  ;;  %v3484_v56 = vunpack.i.l.bf16 %v3483_v54 }
 0x356   :  { %v824_v57 = vpack.c.bf16 %v3484_v56, %v3484_v56  ;;  %v969_v60 = vpack.c.bf16 %v3487_v55, %v3487_v55 }
 0x357   :  { %v1099_v2 = vpop.trf.xlu0 }
 0x358   :  { %v829_v63 = vsel %vm227_vm6, %v824_v57, 0  ;;  %v977_v1 = vsel %vm227_vm6, %v969_v60, 0  ;;  %v1115_v3 = vpack.c.bf16 %v1099_v2, %v1099_v2 }
 0x359   :  { %3233 = vmatpush3.bf16.msra.mxu0 %v829_v63 }
 0x35a   :  { %3244 = vmatprep.subr.bf16.mxu0 %v3672_v15  ;;  %v1122_v4 = vsel %vm227_vm6, %v1115_v3, 0 }
 0x35b   :  { %v1244_v6 = vpop.trf.xlu0 }
 0x35c   :  { %3235 = vmatmul.mubr.msk.bf16.vlgmr.msra.gmra.mxu0 %vm223_vm7, %v3799_v11  ;;  %v1260_v7 = vpack.c.bf16 %v1244_v6, %v1244_v6 }
 0x35d   :  { %3245 = vmatpush3.bf16.msra.mxu0 %v977_v1  ;;  %3246 = vmatprep.mubr.msk.bf16.mxu0 %vm3673_vm1, %v3672_v15 }
 0x35e   :  { %3256 = vmatprep.subr.bf16.mxu0 %v3672_v15  ;;  %v1267_v8 = vsel %vm227_vm6, %v1260_v7, 0 }
 0x364   :  { %3247 = vmatmul.mubr.msk.bf16.vlgmr.msra.gmra.mxu0 %vm223_vm7, %v972_v34 }
 0x365   :  { %3257 = vmatpush3.bf16.msra.mxu0 %v1122_v4  ;;  %3258 = vmatprep.mubr.msk.bf16.mxu0 %vm3673_vm1, %v3672_v15 }
 0x366   :  { %3268 = vmatprep.subr.bf16.mxu0 %v3672_v15 }
 0x36c   :  { %3259 = vmatmul.mubr.msk.bf16.vlgmr.msra.gmra.mxu0 %vm223_vm7, %v1117_v53 }
 0x36d   :  { %3269 = vmatpush3.bf16.msra.mxu0 %v1267_v8  ;;  %3270 = vmatprep.mubr.msk.bf16.mxu0 %vm3673_vm1, %v3672_v15 }
 0x36e   :  { %3280 = vmatprep.subr.bf16.mxu0 %v3672_v15 }
 0x374   :  { %3271 = vmatmul.mubr.msk.bf16.vlgmr.msra.gmra.mxu0 %vm223_vm7, %v1262_v62 }
 0x375   :  { %3284 = vmatprep.mubr.msk.bf16.mxu0 %vm3673_vm1, %v3672_v15 }
 0x3d5   :  { %v265_v9 = vpop.f32.mrf.mxu0 }
 0x3d6   :  { %v3849_v10 = vmul.f32 0.35355338, %v265_v9 }
 0x3d7   :  { %v3188_v11 = vpop.f32.mrf.mxu0 }
 0x3d8   :  { %v272_v12 = vsel %vm223_vm7, %v3849_v10, -inf }
 0x3d9   :  { %273 = vmax.xlane.f32.xlu1 %v272_v12  ;;  %v268_v13 = vpop.f32.mrf.mxu0 }
 0x3db   :  { %v3189_v17 = vpop.f32.mrf.mxu0 }
 0x3dd   :  { %v413_v19 = vpop.f32.mrf.mxu0 }
 0x3de   :  { %v3853_v20 = vmul.f32 0.35355338, %v413_v19 }
 0x3df   :  { %v3200_v21 = vpop.f32.mrf.mxu0 }
 0x3e0   :  { %v420_v22 = vsel %vm223_vm7, %v3853_v20, -inf }
 0x3e1   :  { %v416_v23 = vpop.f32.mrf.mxu0  ;;  %421 = vmax.xlane.f32.xlu0 %v420_v22 }
 0x3e3   :  { %v3201_v24 = vpop.f32.mrf.mxu0 }
 0x3e5   :  { %v558_v25 = vpop.f32.mrf.mxu0 }
 0x3e6   :  { %v564_v26 = vmul.f32 0.35355338, %v558_v25 }
 0x3e7   :  { %v3212_v27 = vpop.f32.mrf.mxu0 }
 0x3e8   :  { %v565_v28 = vsel %vm223_vm7, %v564_v26, -inf }
 0x3e9   :  { %566 = vmax.xlane.f32.xlu1 %v565_v28  ;;  %v561_v29 = vpop.f32.mrf.mxu0 }
 0x3eb   :  { %v3213_v30 = vpop.f32.mrf.mxu0 }
 0x3ed   :  { %v703_v31 = vpop.f32.mrf.mxu0 }
 0x3ee   :  { %v709_v32 = vmul.f32 0.35355338, %v703_v31 }
 0x3ef   :  { %v3224_v33 = vpop.f32.mrf.mxu0 }
 0x3f0   :  { %v710_v34 = vsel %vm223_vm7, %v709_v32, -inf }
 0x3f1   :  { %711 = vmax.xlane.f32.xlu1 %v710_v34  ;;  %v706_v35 = vpop.f32.mrf.mxu0 }
 0x3f3   :  { %v3225_v36 = vpop.f32.mrf.mxu0 }
 0x402   :  { %180 = vrot.lane.b32.xlu1 %v178_v40, %s3682_s17 }
 0x41c   :  { %v865_v41 = vpop.f32.mrf.mxu0 }
 0x41d   :  { %v3868_v42 = vmul.f32 0.35355338, %v865_v41 }
 0x41e   :  { %v3236_v45 = vpop.f32.mrf.mxu0 }
 0x41f   :  { %v872_v46 = vsel %vm223_vm7, %v3868_v42, -inf }
 0x420   :  { %873 = vmax.xlane.f32.xlu0 %v872_v46  ;;  %v868_v47 = vpop.f32.mrf.mxu0 }
 0x422   :  { %v3237_v48 = vpop.f32.mrf.mxu0 }
 0x424   :  { %v1013_v49 = vpop.f32.mrf.mxu0 }
 0x425   :  { %v1019_v50 = vmul.f32 0.35355338, %v1013_v49 }
 0x426   :  { %v3248_v51 = vpop.f32.mrf.mxu0 }
 0x427   :  { %v1020_v52 = vsel %vm223_vm7, %v1019_v50, -inf }
 0x428   :  { %1021 = vmax.xlane.f32.xlu1 %v1020_v52  ;;  %v1016_v39 = vpop.f32.mrf.mxu0 }
 0x42a   :  { %v3249_v53 = vpop.f32.mrf.mxu0 }
 0x42c   :  { %v1158_v54 = vpop.f32.mrf.mxu0 }
 0x42d   :  { %v1164_v23 = vmul.f32 0.35355338, %v1158_v54 }
 0x42e   :  { %v3260_v55 = vpop.f32.mrf.mxu0 }
 0x42f   :  { %v1165_v25 = vsel %vm223_vm7, %v1164_v23, -inf }
 0x430   :  { %v1161_v56 = vpop.f32.mrf.mxu0 }
 0x432   :  { %v3261_v57 = vpop.f32.mrf.mxu0 }
 0x434   :  { %v1303_v60 = vpop.f32.mrf.mxu0 }
 0x435   :  { %v1309_v24 = vmul.f32 0.35355338, %v1303_v60 }
 0x436   :  { %v3272_v62 = vpop.f32.mrf.mxu0 }
 0x438   :  { %v1306_v63 = vpop.f32.mrf.mxu0 }
 0x43a   :  { %v3273_v1 = vpop.f32.mrf.mxu0 }
 0x462   :  { %v274_v2 = vpop.xlane.xlu1 %273 }
 0x463   :  { %v275_v11 = vsub.f32 %v3849_v10, %v274_v2  ;;  %v1310_v10 = vsel %vm223_vm7, %v1309_v24, -inf }
 0x465   :  { %v276_v17 = vmul.f32 1.442695, %v275_v11 }
 0x46a   :  { %v422_v12 = vpop.xlane.xlu0 %421 }
 0x46b   :  { %v423_v19 = vsub.f32 %v3853_v20, %v422_v12 }
 0x46d   :  { %v424_v21 = vmul.f32 1.442695, %v423_v19 }
 0x472   :  { %v567_v3 = vpop.xlane.xlu1 %566 }
 0x473   :  { %v568_v22 = vsub.f32 %v564_v26, %v567_v3 }
 0x47a   :  { %v712_v4 = vpop.xlane.xlu1 %711 }
 0x47b   :  { %v713_v9 = vsub.f32 %v709_v32, %v712_v4 }
 0x47d   :  { %v714_v13 = vmul.f32 1.442695, %v713_v9 }
 0x47e   :  { %v3873_v6 = vpop.permute.xlu1 %180 }
 0x47f   :  { %v183_v7 = vadd.f32 %v3873_v6, %v3785_v0  ;;  %3574 = vpow2.f32 %v714_v13  ;;  %v569_v0 = vmul.f32 1.442695, %v568_v22  ;;  %v184_v22 = vadd.f32 %v3873_v6, %v3788_v5 }
 0x480   :  { %3576 = vpow2.f32 %v276_v17 }
 0x481   :  { %v284_v8 = vpack.c.bf16 %v183_v7, %v183_v7  ;;  %3578 = vpow2.f32 %v424_v21 }
 0x482   :  { %3580 = vpow2.f32 %v569_v0 }
 0x483   :  { %286 = vrot.lane.b32.xlu0 %v284_v8, %s3682_s17  ;;  %432 = vrot.lane.b32.xlu1 %v284_v8, %s3683_s18 }
 0x48c   :  { %v3882_v27 = vpop.eup %3574 }
 0x48d   :  { %v3577_v28 = vpop.eup %3576  ;;  %v716_v20 = vsel %vm223_vm7, %v3882_v27, 0.0 }
 0x48e   :  { %v278_v26 = vsel %vm223_vm7, %v3577_v28, 0.0  ;;  %v3579_v29 = vpop.eup %3578 }
 0x48f   :  { %v426_v30 = vsel %vm223_vm7, %v3579_v29, 0.0  ;;  %v3889_v31 = vpop.eup %3580 }
 0x490   :  { %v571_v33 = vsel %vm223_vm7, %v3889_v31, 0.0 }
 0x4a2   :  { %1166 = vmax.xlane.f32.xlu0 %v1165_v25 }
 0x4a6   :  { %1311 = vmax.xlane.f32.xlu0 %v1310_v10 }
 0x4a7   :  { %717 = vadd.xlane.f32.xlu1 %v716_v20 }
 0x4a9   :  { %v874_v41 = vpop.xlane.xlu0 %873 }
 0x4aa   :  { %279 = vadd.xlane.f32.xlu0 %v278_v26  ;;  %v875_v45 = vsub.f32 %v3868_v42, %v874_v41 }
 0x4ac   :  { %v876_v46 = vmul.f32 1.442695, %v875_v45 }
 0x4ae   :  { %427 = vadd.xlane.f32.xlu0 %v426_v30 }
 0x4b1   :  { %v1022_v32 = vpop.xlane.xlu1 %1021 }
 0x4b2   :  { %v1023_v34 = vsub.f32 %v1019_v50, %v1022_v32  ;;  %572 = vadd.xlane.f32.xlu0 %v571_v33 }
 0x4b4   :  { %v1024_v35 = vmul.f32 1.442695, %v1023_v34 }
 0x4b6   :  { %3582 = vpow2.f32 %v1024_v35 }
 0x4b7   :  { %3584 = vpow2.f32 %v876_v46 }
 0x4c3   :  { %v3893_v36 = vpop.eup %3582 }
 0x4c4   :  { %v1026_v40 = vsel %vm223_vm7, %v3893_v36, 0.0  ;;  %v3900_v47 = vpop.eup %3584 }
 0x4c5   :  { %1027 = vadd.xlane.f32.xlu1 %v1026_v40  ;;  %v878_v48 = vsel %vm223_vm7, %v3900_v47, 0.0 }
 0x4c8   :  { %577 = vrot.lane.b32.xlu0 %v284_v8, %s3684_s19 }
 0x4d6   :  { %722 = vrot.lane.b32.xlu1 %v284_v8, %s3685_s20 }
 0x4e7   :  { %879 = vadd.xlane.f32.xlu0 %v878_v48 }
 0x4f5   :  { %v287_v49 = vpop.permute.xlu0 %286  ;;  %v433_v2 = vpop.permute.xlu1 %432 }
 0x4f6   :  { %v292_v50 = vsel %vm227_vm6, %v287_v49, 0  ;;  %v438_v11 = vsel %vm227_vm6, %v433_v2, 0 }
 0x4f7   :  { %3191 = vmatpush3.bf16.msra.mxu1 %v292_v50 }
 0x4f8   :  { %3202 = vmatprep.subr.bf16.mxu1 %v3672_v15 }
 0x52b   :  { %v1167_v51 = vpop.xlane.xlu0 %1166 }
 0x52c   :  { %v1168_v52 = vsub.f32 %v1164_v23, %v1167_v51 }
 0x52e   :  { %v1169_v42 = vmul.f32 1.442695, %v1168_v52 }
 0x52f   :  { %v1312_v39 = vpop.xlane.xlu0 %1311 }
 0x530   :  { %3586 = vpow2.f32 %v1169_v42  ;;  %v1313_v53 = vsub.f32 %v1309_v24, %v1312_v39  ;;  %v718_v9 = vpop.xlane.xlu1 %717  ;;  %v884_v24 = vpack.c.bf16 %v184_v22, %v184_v22 }
 0x532   :  { %v1314_v54 = vmul.f32 1.442695, %v1313_v53  ;;  %v3973_v53 = vld [vmem:[%s4299_s1 + $0x1c] ss:$12 sps:$4 sm:$0xff]  }
 0x533   :  { %v280_v55 = vpop.xlane.xlu0 %279 }
 0x534   :  { %3588 = vpow2.f32 %v1314_v54 }
 0x535   :  { %3590 = vrcp.f32 %v280_v55 }
 0x537   :  { %v428_v56 = vpop.xlane.xlu0 %427 }
 0x538   :  { %3592 = vrcp.f32 %v428_v56 }
 0x53b   :  { %v573_v60 = vpop.xlane.xlu0 %572 }
 0x53c   :  { %3594 = vrcp.f32 %v573_v60 }
 0x53d   :  { %v3906_v57 = vpop.eup %3586  ;;  %3596 = vrcp.f32 %v718_v9 }
 0x53e   :  { %v1171_v62 = vsel %vm223_vm7, %v3906_v57, 0.0 }
 0x53f   :  { %1172 = vadd.xlane.f32.xlu0 %v1171_v62  ;;  %v578_v13 = vpop.permute.xlu0 %577 }
 0x540   :  { %v583_v23 = vsel %vm227_vm6, %v578_v13, 0 }
 0x541   :  { %v3910_v63 = vpop.eup %3588 }
 0x542   :  { %v3591_v1 = vpop.eup %3590  ;;  %v1316_v3 = vsel %vm223_vm7, %v3910_v63, 0.0 }
 0x543   :  { %1317 = vadd.xlane.f32.xlu1 %v1316_v3  ;;  %v282_v4 = vmul.f32 %v3591_v1, %v3577_v28  ;;  %v3935_v28 = vld [vmem:[%s4299_s1 + $0x4] ss:$12 sps:$4 sm:$0xff]  }
 0x545   :  { %v283_v7 = vpack.c.bf16 %v282_v4, %v282_v4  ;;  %v3593_v8 = vpop.eup %3592 }
 0x546   :  { %v430_v12 = vmul.f32 %v3593_v8, %v3579_v29 }
 0x547   :  { %3193 = vmatmul.mubr.msk.bf16.vlgmr.msra.gmra.mxu1 %vm223_vm7, %v283_v7 }
 0x548   :  { %3203 = vmatpush3.bf16.msra.mxu1 %v438_v11  ;;  %3204 = vmatprep.mubr.msk.bf16.mxu1 %vm3673_vm1, %v3672_v15  ;;  %v431_v17 = vpack.c.bf16 %v430_v12, %v430_v12 }
 0x549   :  { %3214 = vmatprep.subr.bf16.mxu1 %v3672_v15  ;;  %v3595_v19 = vpop.eup %3594 }
 0x54a   :  { %v575_v0 = vmul.f32 %v3595_v19, %v3889_v31  ;;  %v3597_v6 = vpop.eup %3596 }
 0x54c   :  { %v576_v5 = vpack.c.bf16 %v575_v0, %v575_v0 }
 0x54e   :  { %v1028_v21 = vpop.xlane.xlu1 %1027 }
 0x54f   :  { %3205 = vmatmul.mubr.msk.bf16.vlgmr.msra.gmra.mxu1 %vm223_vm7, %v431_v17 }
 0x550   :  { %3215 = vmatpush3.bf16.msra.mxu1 %v583_v23  ;;  %3216 = vmatprep.mubr.msk.bf16.mxu1 %vm3673_vm1, %v3672_v15 }
 0x551   :  { %3226 = vmatprep.subr.bf16.mxu1 %v3672_v15 }
 0x552   :  { %v723_v25 = vpop.permute.xlu1 %722 }
 0x553   :  { %v728_v10 = vsel %vm227_vm6, %v723_v25, 0 }
 0x554   :  { %1392 = vrot.lane.b32.xlu1 %v3739_v14, %s3674_s7  ;;  %v720_v14 = vmul.f32 %v3597_v6, %v3882_v27 }
 0x555   :  { %886 = vrot.lane.b32.xlu0 %v884_v24, %s3682_s17 }
 0x556   :  { %v721_v20 = vpack.c.bf16 %v720_v14, %v720_v14 }
 0x557   :  { %3217 = vmatmul.mubr.msk.bf16.vlgmr.msra.gmra.mxu1 %vm223_vm7, %v576_v5 }
 0x558   :  { %3227 = vmatpush3.bf16.msra.mxu1 %v728_v10  ;;  %3228 = vmatprep.mubr.msk.bf16.mxu1 %vm3673_vm1, %v3672_v15 }
 0x559   :  { %1032 = vrot.lane.b32.xlu0 %v884_v24, %s3683_s18  ;;  %3238 = vmatprep.subr.bf16.mxu1 %v3672_v15 }
 0x55a   :  { %1514 = vrot.lane.b32.xlu1 %v3935_v28, %s3678_s11 }
 0x55d   :  { %1177 = vrot.lane.b32.xlu0 %v884_v24, %s3684_s19 }
 0x55f   :  { %3229 = vmatmul.mubr.msk.bf16.vlgmr.msra.gmra.mxu1 %vm223_vm7, %v721_v20 }
 0x560   :  { %3240 = vmatprep.mubr.msk.bf16.mxu1 %vm3673_vm1, %v3672_v15 }
 0x561   :  { %1322 = vrot.lane.b32.xlu0 %v884_v24, %s3685_s20 }
 0x570   :  { %v880_v26 = vpop.xlane.xlu0 %879 }
 0x571   :  { %3598 = vrcp.f32 %v880_v26 }
 0x572   :  { %3600 = vrcp.f32 %v1028_v21 }
 0x57e   :  { %v3599_v29 = vpop.eup %3598 }
 0x57f   :  { %v882_v30 = vmul.f32 %v3599_v29, %v3900_v47  ;;  %v3601_v34 = vpop.eup %3600 }
 0x580   :  { %v1030_v45 = vmul.f32 %v3601_v34, %v3893_v36 }
 0x581   :  { %v883_v33 = vpack.c.bf16 %v882_v30, %v882_v30  ;;  %v1460_v30 = vrot.slane %v3862_v37, %v1444_v38 }
 0x582   :  { %v1031_v47 = vpack.c.bf16 %v1030_v45, %v1030_v45 }
 0x5c8   :  { %v1173_v27 = vpop.xlane.xlu0 %1172 }
 0x5c9   :  { %3602 = vrcp.f32 %v1173_v27 }
 0x5cc   :  { %v887_v31 = vpop.permute.xlu0 %886  ;;  %v1318_v35 = vpop.xlane.xlu1 %1317 }
 0x5cd   :  { %v892_v32 = vsel %vm227_vm6, %v887_v31, 0  ;;  %3604 = vrcp.f32 %v1318_v35 }
 0x5ce   :  { %3239 = vmatpush3.bf16.msra.mxu1 %v892_v32 }
 0x5cf   :  { %3250 = vmatprep.subr.bf16.mxu1 %v3672_v15 }
 0x5d0   :  { %v1033_v40 = vpop.permute.xlu0 %1032  ;;  %v1393_v21 = vpop.permute.xlu1 %1392 }
 0x5d1   :  { %v1038_v41 = vsel %vm227_vm6, %v1033_v40, 0  ;;  %3241 = vmatmul.mubr.msk.bf16.vlgmr.msra.gmra.mxu1 %vm223_vm7, %v883_v33  ;;  %3281 = vmatpush3.bf16.msra.mxu0 %v1393_v21 }
 0x5d2   :  { %3251 = vmatpush3.bf16.msra.mxu1 %v1038_v41  ;;  %3252 = vmatprep.mubr.msk.bf16.mxu1 %vm3673_vm1, %v3672_v15 }
 0x5d3   :  { %3262 = vmatprep.subr.bf16.mxu1 %v3672_v15  ;;  %3282 = vmatprep.subr.bf16.mxu0 %v3672_v15 }
 0x5d4   :  { %v1178_v46 = vpop.permute.xlu0 %1177 }
 0x5d5   :  { %v1183_v49 = vsel %vm227_vm6, %v1178_v46, 0 }
 0x5d6   :  { %v3603_v48 = vpop.eup %3602 }
 0x5d7   :  { %v1175_v50 = vmul.f32 %v3603_v48, %v3906_v57 }
 0x5d8   :  { %v1323_v51 = vpop.permute.xlu0 %1322 }
 0x5d9   :  { %3253 = vmatmul.mubr.msk.bf16.vlgmr.msra.gmra.mxu1 %vm223_vm7, %v1031_v47  ;;  %v1176_v52 = vpack.c.bf16 %v1175_v50, %v1175_v50  ;;  %v1328_v36 = vsel %vm227_vm6, %v1323_v51, 0 }
 0x5da   :  { %3263 = vmatpush3.bf16.msra.mxu1 %v1183_v49  ;;  %3264 = vmatprep.mubr.msk.bf16.mxu1 %vm3673_vm1, %v3672_v15  ;;  %v3605_v42 = vpop.eup %3604 }
 0x5db   :  { %3274 = vmatprep.subr.bf16.mxu1 %v3672_v15  ;;  %v1320_v39 = vmul.f32 %v3605_v42, %v3910_v63 }
 0x5dd   :  { %v1321_v54 = vpack.c.bf16 %v1320_v39, %v1320_v39 }
 0x5e1   :  { %3265 = vmatmul.mubr.msk.bf16.vlgmr.msra.gmra.mxu1 %vm223_vm7, %v1176_v52 }
 0x5e2   :  { %3275 = vmatpush3.bf16.msra.mxu1 %v1328_v36  ;;  %3276 = vmatprep.mubr.msk.bf16.mxu1 %vm3673_vm1, %v3672_v15 }
 0x5e3   :  { %3288 = vmatprep.subr.bf16.mxu1 %v3672_v15 }
 0x5e9   :  { %3277 = vmatmul.mubr.msk.bf16.vlgmr.msra.gmra.mxu1 %vm223_vm7, %v1321_v54 }
 0x5ea   :  { %3289 = vmatpush3.bf16.msra.mxu1 %v3973_v53  ;;  %3292 = vmatprep.mubr.msk.bf16.mxu1 %vm3673_vm1, %v3672_v15 }
 0x5eb   :  { %3290 = vmatprep.subr.bf16.mxu1 %v3672_v15 }
 0x5ee   :  { %3291 = vmatpush3.bf16.msra.mxu1 %v3935_v28 }
 0x5ef   :  { %3304 = vmatprep.subr.bf16.mxu1 %v3672_v15 }
 0x5f1   :  { %3293 = vmatmul.mubr.msk.bf16.vlgmr.msra.gmra.mxu1 %vm47_vm0, %v1456_v61 }
 0x5f2   :  { %3306 = vmatprep.mubr.msk.bf16.mxu1 %vm3673_vm1, %v3672_v15 }
 0x607   :  { %v3988_v55 = vpop.f32.mrf.mxu1 }
 0x609   :  { %v3194_v56 = vpop.f32.mrf.mxu1 }
 0x60b   :  { %v331_v57 = vpop.f32.mrf.mxu1 }
 0x60d   :  { %v3195_v60 = vpop.f32.mrf.mxu1 }
 0x60f   :  { %v474_v62 = vpop.f32.mrf.mxu1 }
 0x611   :  { %v3206_v63 = vpop.f32.mrf.mxu1 }
 0x613   :  { %v477_v1 = vpop.f32.mrf.mxu1 }
 0x615   :  { %v3207_v2 = vpop.f32.mrf.mxu1 }
 0x616   :  { %v1389_v2 = vrot.slane %v3862_v37, %v98_v43 }
 0x617   :  { %v619_v3 = vpop.f32.mrf.mxu1 }
 0x619   :  { %v3218_v4 = vpop.f32.mrf.mxu1 }
 0x61b   :  { %v622_v7 = vpop.f32.mrf.mxu1 }
 0x61d   :  { %v3219_v8 = vpop.f32.mrf.mxu1 }
 0x61f   :  { %v764_v9 = vpop.f32.mrf.mxu1 }
 0x621   :  { %v3230_v58 = vpop.f32.mrf.mxu1 }
 0x623   :  { %v767_v59 = vpop.f32.mrf.mxu1 }
 0x624   :  { %v4032_v59 = vld [vmem:[%s4298_s0] sm:$0xff] }
 0x625   :  { %v3231_v61 = vpop.f32.mrf.mxu1 }
 0x691   :  { %v928_v11 = vpop.f32.mrf.mxu1 }
 0x693   :  { %v3242_v12 = vpop.f32.mrf.mxu1 }
 0x695   :  { %v931_v13 = vpop.f32.mrf.mxu1 }
 0x697   :  { %v3243_v17 = vpop.f32.mrf.mxu1 }
 0x698   :  { %v1567_v17 = vrot.slane %v3862_v37, %v1452_v44 }
 0x699   :  { %v1074_v19 = vpop.f32.mrf.mxu1 }
 0x69a   :  { %v3488_v22 = vpack.i.bf16 %v1074_v19, %v474_v62 }
 0x69b   :  { %v3254_v23 = vpop.f32.mrf.mxu1 }
 0x69c   :  { %3489 = vrot.lane.b32.xlu0 %v3488_v22, %s3686_s25 }
 0x69d   :  { %v1077_v0 = vpop.f32.mrf.mxu1 }
 0x69f   :  { %v3255_v24 = vpop.f32.mrf.mxu1 }
 0x6a1   :  { %v1219_v25 = vpop.f32.mrf.mxu1 }
 0x6a2   :  { %v3493_v5 = vpack.i.bf16 %v1219_v25, %v619_v3 }
 0x6a3   :  { %v3266_v6 = vpop.f32.mrf.mxu1 }
 0x6a4   :  { %3494 = vrot.lane.b32.xlu0 %v3493_v5, %s3687_s26 }
 0x6a5   :  { %v1222_v10 = vpop.f32.mrf.mxu1 }
 0x6a7   :  { %v3267_v14 = vpop.f32.mrf.mxu1 }
 0x6a9   :  { %v1364_v20 = vpop.f32.mrf.mxu1 }
 0x6aa   :  { %v3498_v26 = vpack.i.bf16 %v1364_v20, %v764_v9 }
 0x6ab   :  { %v3278_v29 = vpop.f32.mrf.mxu1 }
 0x6ac   :  { %3499 = vrot.lane.b32.xlu0 %v3498_v26, %s3688_s27 }
 0x6ad   :  { %v1367_v27 = vpop.f32.mrf.mxu1 }
 0x6af   :  { %v3279_v31 = vpop.f32.mrf.mxu1 }
 0x6b0   :  { %1390 = vrot.lane.b32.xlu0 %v3748_v16, %s3674_s7 }
 0x6b1   :  { %v1506_v32 = vpop.f32.mrf.mxu1 }
 0x6b2   :  { %v1507_v33 = vadd.f32 %v1506_v32, %v1460_v30 }
 0x6b3   :  { %v3294_v34 = vpop.f32.mrf.mxu1 }
 0x6b4   :  { %v3999_v35 = vpack.c.bf16 %v1507_v33, %v1507_v33  ;;  %1516 = vrot.lane.b32.xlu0 %v3973_v53, %s3678_s11 }
 0x6b5   :  { %v1509_v40 = vpop.f32.mrf.mxu1 }
 0x6b6   :  { %1761 = vrot.lane.b32.xlu1 %v3999_v35, %s3676_s9  ;;  %v1510_v38 = vadd.f32 %v1509_v40, %v1460_v30 }
 0x6b7   :  { %v3295_v41 = vpop.f32.mrf.mxu1 }
 0x6b8   :  { %1906 = vrot.lane.b32.xlu0 %v3999_v35, %s3675_s8  ;;  %v4009_v16 = vpack.c.bf16 %v1510_v38, %v1510_v38 }
 0x6bc   :  { %2051 = vrot.lane.b32.xlu0 %v3999_v35, %s3677_s10 }
 0x6c0   :  { %2356 = vrot.lane.b32.xlu0 %v4009_v16, %s3676_s9 }
 0x70e   :  { %v3490_v45 = vpop.permute.xlu0 %3489 }
 0x70f   :  { %v3492_v47 = vunpack.i.h.bf16 %v3490_v45  ;;  %v3491_v48 = vunpack.i.l.bf16 %v3490_v45 }
 0x711   :  { %v1382_v52 = vsel %vm223_vm7, %v928_v11, %v3492_v47  ;;  %v782_v42 = vsel %vm223_vm7, %v3988_v55, %v3491_v48  ;;  %v1515_v55 = vpop.permute.xlu1 %1514  ;;  %v4038_v11 = vld [vmem:[%s4298_s0 + $0x8] sm:$0xff] }
 0x716   :  { %v3495_v46 = vpop.permute.xlu0 %3494 }
 0x717   :  { %v3497_v49 = vunpack.i.h.bf16 %v3495_v46  ;;  %v3496_v50 = vunpack.i.l.bf16 %v3495_v46 }
 0x719   :  { %v784_v54 = vsel %vm783_vm8, %v782_v42, %v3496_v50  ;;  %v1383_v56 = vsel %vm783_vm8, %v1382_v52, %v3497_v49 }
 0x71e   :  { %v3500_v51 = vpop.permute.xlu0 %3499 }
 0x71f   :  { %v3502_v36 = vunpack.i.h.bf16 %v3500_v51  ;;  %v3501_v39 = vunpack.i.l.bf16 %v3500_v51 }
 0x721   :  { %v786_v57 = vsel %vm785_vm9, %v784_v54, %v3501_v39  ;;  %v1384_v60 = vsel %vm785_vm9, %v1383_v56, %v3502_v36 }
 0x722   :  { %v1391_v62 = vpop.permute.xlu0 %1390  ;;  %v1385_v63 = vpack.c.bf16 %v1384_v60, %v786_v57 }
 0x723   :  { %3283 = vmatpush3.bf16.msra.mxu0 %v1391_v62 }
 0x724   :  { %3296 = vmatprep.subr.bf16.mxu0 %v3672_v15 }
 0x726   :  { %v1517_v1 = vpop.permute.xlu0 %1516  ;;  %3285 = vmatmul.mubr.msk.bf16.vlgmr.msra.gmra.mxu0 %vm47_vm0, %v1385_v63 }
 0x727   :  { %3297 = vmatpush3.bf16.msra.mxu0 %v1517_v1  ;;  %3300 = vmatprep.mubr.msk.bf16.mxu0 %vm3673_vm1, %v3672_v15 }
 0x728   :  { %3298 = vmatprep.subr.bf16.mxu0 %v3672_v15  ;;  %v1762_v44 = vpop.permute.xlu1 %1761 }
 0x72a   :  { %v1907_v25 = vpop.permute.xlu0 %1906 }
 0x72b   :  { %3299 = vmatpush3.bf16.msra.mxu0 %v1515_v55 }
 0x72c   :  { %3310 = vmatprep.subr.bf16.mxu0 %v3672_v15 }
 0x72e   :  { %v2052_v5 = vpop.permute.xlu0 %2051 }
 0x732   :  { %v4056_v6 = vpop.permute.xlu0 %2356 }
 0x7e6   :  { %v1433_v3 = vpop.f32.mrf.mxu0 }
 0x7e7   :  { %v1434_v7 = vadd.f32 %v1433_v3, %v1389_v2 }
 0x7e8   :  { %v3286_v4 = vpop.f32.mrf.mxu0 }
 0x7e9   :  { %v1440_v61 = vadd.f32 %v4032_v59, %v1434_v7 }
 0x7ea   :  { %v1436_v8 = vpop.f32.mrf.mxu0 }
 0x7eb   :  { %v1437_v9 = vadd.f32 %v1436_v8, %v1389_v2 }
 0x7ec   :  { %v3287_v58 = vpop.f32.mrf.mxu0 }
 0x7ed   :  { %v1441_v43 = vadd.f32 %v4038_v11, %v1437_v9 }
 0x7ef   :  { %v1513_v12 = vpack.c.bf16 %v1441_v43, %v1440_v61 }
 0x7f1   :  { %3301 = vmatmul.mubr.msk.bf16.vlgmr.msra.gmra.mxu0 %vm47_vm0, %v1513_v12 }
 0x7f2   :  { %3312 = vmatprep.mubr.msk.bf16.mxu0 %vm3673_vm1, %v3672_v15 }
 0x8b1   :  { %v4044_v13 = vpop.f32.mrf.mxu0 }
 0x8b2   :  { %v1568_v22 = vadd.f32 %v1567_v17, %v4044_v13 }
 0x8b3   :  { %v3302_v19 = vpop.f32.mrf.mxu0 }
 0x8b5   :  { %v4049_v21 = vpop.f32.mrf.mxu0 }
 0x8b6   :  { %v1569_v23 = vadd.f32 %v1567_v17, %v4049_v21 }
 0x8b7   :  { %v3303_v0 = vpop.f32.mrf.mxu0 }
 0x8b8   :  { %v3508_v24 = vpack.i.bf16 %v1569_v23, %v1568_v22 }
 0x8ba   :  { %3509 = vrot.lane.b32.xlu1 %v3508_v24, %s3675_s8  ;;  %3504 = vrot.lane.b32.xlu0 %v3508_v24, %s3676_s9 }
 0x8be   :  { %3514 = vrot.lane.b32.xlu0 %v3508_v24, %s3677_s10 }
 0x92c   :  { %v3505_v10 = vpop.permute.xlu0 %3504  ;;  %v3510_v20 = vpop.permute.xlu1 %3509 }
 0x92d   :  { %v3506_v14 = vunpack.i.l.bf16 %v3505_v10  ;;  %v3511_v27 = vunpack.i.l.bf16 %v3510_v20  ;;  %v3507_v32 = vunpack.i.h.bf16 %v3505_v10  ;;  %v3512_v34 = vunpack.i.h.bf16 %v3510_v20 }
 0x92f   :  { %v3518_v26 = vpack.i.bf16 %v3506_v14, %v1568_v22  ;;  %v3532_v33 = vpack.i.bf16 %v3507_v32, %v1569_v23 }
 0x930   :  { %v3515_v29 = vpop.permute.xlu0 %3514 }
 0x931   :  { %v3516_v30 = vunpack.i.l.bf16 %v3515_v29  ;;  %3519 = vxpose.xlu1.b32.start.end [1/1] (short) (narrow) %v3518_v26, 8  ;;  %v3517_v40 = vunpack.i.h.bf16 %v3515_v29 }
 0x933   :  { %v3525_v31 = vpack.i.bf16 %v3516_v30, %v3511_v27 }
 0x935   :  { %3526 = vxpose.xlu0.b32.start.end [1/1] (short) (narrow) %v3525_v31, 8 }
 0x94f   :  { %2501 = vrot.lane.b32.xlu1 %v4009_v16, %s3675_s8 }
 0x95e   :  { %2646 = vrot.lane.b32.xlu0 %v4009_v16, %s3677_s10 }
 0x978   :  { %3533 = vxpose.xlu1.b32.start.end [1/1] (short) (narrow) %v3532_v33, 8 }
 0x97c   :  { %2468 = vxpose.xlu0.b32.start.end [1/1] (short) (narrow) %v3512_v34, 8  ;;  %2613 = vxpose.xlu1.b32.start.end [1/1] (short) (narrow) %v3517_v40, 8 }
 0x9ad   :  { %v3520_v41 = vpop.trf.xlu1 }
 0x9ae   :  { %v3524_v38 = vunpack.i.h.bf16 %v3520_v41  ;;  %v3521_v45 = vunpack.i.l.bf16 %v3520_v41 }
 0x9b0   :  { %v1613_v46 = vpack.c.bf16 %v3521_v45, %v3521_v45  ;;  %v1759_v47 = vpack.c.bf16 %v3524_v38, %v3524_v38 }
 0x9b1   :  { %v3527_v48 = vpop.trf.xlu0 }
 0x9b2   :  { %v1618_v49 = vsel %vm227_vm6, %v1613_v46, 0  ;;  %v1767_v50 = vsel %vm227_vm6, %v1759_v47, 0  ;;  %v3528_v51 = vunpack.i.l.bf16 %v3527_v48  ;;  %v3531_v42 = vunpack.i.h.bf16 %v3527_v48 }
 0x9b3   :  { %3305 = vmatpush3.bf16.msra.mxu1 %v1618_v49 }
 0x9b4   :  { %3316 = vmatprep.subr.bf16.mxu1 %v3672_v15  ;;  %v1905_v52 = vpack.c.bf16 %v3528_v51, %v3528_v51  ;;  %v2050_v39 = vpack.c.bf16 %v3531_v42, %v3531_v42 }
 0x9b6   :  { %3307 = vmatmul.mubr.msk.bf16.vlgmr.msra.gmra.mxu1 %vm223_vm7, %v3999_v35  ;;  %v1912_v36 = vsel %vm227_vm6, %v1905_v52, 0  ;;  %v2057_v35 = vsel %vm227_vm6, %v2050_v39, 0 }
 0x9b7   :  { %3317 = vmatpush3.bf16.msra.mxu1 %v1767_v50  ;;  %3318 = vmatprep.mubr.msk.bf16.mxu1 %vm3673_vm1, %v3672_v15 }
 0x9b8   :  { %3328 = vmatprep.subr.bf16.mxu1 %v3672_v15 }
 0x9be   :  { %3319 = vmatmul.mubr.msk.bf16.vlgmr.msra.gmra.mxu1 %vm223_vm7, %v1762_v44 }
 0x9bf   :  { %3329 = vmatpush3.bf16.msra.mxu1 %v1912_v36  ;;  %3330 = vmatprep.mubr.msk.bf16.mxu1 %vm3673_vm1, %v3672_v15 }
 0x9c0   :  { %3340 = vmatprep.subr.bf16.mxu1 %v3672_v15 }
 0x9c1   :  { %v2502_v54 = vpop.permute.xlu1 %2501 }
 0x9c6   :  { %3331 = vmatmul.mubr.msk.bf16.vlgmr.msra.gmra.mxu1 %vm223_vm7, %v1907_v25 }
 0x9c7   :  { %3341 = vmatpush3.bf16.msra.mxu1 %v2057_v35  ;;  %3342 = vmatprep.mubr.msk.bf16.mxu1 %vm3673_vm1, %v3672_v15 }
 0x9c8   :  { %3352 = vmatprep.subr.bf16.mxu1 %v3672_v15 }
 0x9ce   :  { %3343 = vmatmul.mubr.msk.bf16.vlgmr.msra.gmra.mxu1 %vm223_vm7, %v2052_v5 }
 0x9cf   :  { %3354 = vmatprep.mubr.msk.bf16.mxu1 %vm3673_vm1, %v3672_v15 }
 0x9d0   :  { %v2647_v63 = vpop.permute.xlu0 %2646 }
 0x9f4   :  { %v3534_v56 = vpop.trf.xlu1 }
 0x9f5   :  { %v3538_v57 = vunpack.i.h.bf16 %v3534_v56  ;;  %v3535_v60 = vunpack.i.l.bf16 %v3534_v56 }
 0x9f7   :  { %v2208_v62 = vpack.c.bf16 %v3535_v60, %v3535_v60  ;;  %v2354_v55 = vpack.c.bf16 %v3538_v57, %v3538_v57  ;;  %v1572_v57 = vsub.s32 4, %v3756_v18 }
 0x9f8   :  { %v2484_v2 = vpop.trf.xlu0  ;;  %v2629_v8 = vpop.trf.xlu1 }
 0x9f9   :  { %v2213_v1 = vsel %vm227_vm6, %v2208_v62, 0  ;;  %v2362_v3 = vsel %vm227_vm6, %v2354_v55, 0  ;;  %v2500_v4 = vpack.c.bf16 %v2484_v2, %v2484_v2 }
 0x9fa   :  { %3353 = vmatpush3.bf16.msra.mxu1 %v2213_v1 }
 0x9fb   :  { %3364 = vmatprep.subr.bf16.mxu1 %v3672_v15  ;;  %v2507_v7 = vsel %vm227_vm6, %v2500_v4, 0 }
 0x9fd   :  { %3355 = vmatmul.mubr.msk.bf16.vlgmr.msra.gmra.mxu1 %vm223_vm7, %v4009_v16  ;;  %v2645_v16 = vpack.c.bf16 %v2629_v8, %v2629_v8 }
 0x9fe   :  { %3365 = vmatpush3.bf16.msra.mxu1 %v2362_v3  ;;  %3366 = vmatprep.mubr.msk.bf16.mxu1 %vm3673_vm1, %v3672_v15 }
 0x9ff   :  { %3376 = vmatprep.subr.bf16.mxu1 %v3672_v15  ;;  %v2652_v9 = vsel %vm227_vm6, %v2645_v16, 0 }
 0xa05   :  { %3367 = vmatmul.mubr.msk.bf16.vlgmr.msra.gmra.mxu1 %vm223_vm7, %v4056_v6 }
 0xa06   :  { %3377 = vmatpush3.bf16.msra.mxu1 %v2507_v7  ;;  %3378 = vmatprep.mubr.msk.bf16.mxu1 %vm3673_vm1, %v3672_v15 }
 0xa07   :  { %3388 = vmatprep.subr.bf16.mxu1 %v3672_v15 }
 0xa0d   :  { %3379 = vmatmul.mubr.msk.bf16.vlgmr.msra.gmra.mxu1 %vm223_vm7, %v2502_v54 }
 0xa0e   :  { %3389 = vmatpush3.bf16.msra.mxu1 %v2652_v9  ;;  %3390 = vmatprep.mubr.msk.bf16.mxu1 %vm3673_vm1, %v3672_v15 }
 0xa0f   :  { %3400 = vmatprep.subr.bf16.mxu1 %v3672_v15 }
 0xa15   :  { %3391 = vmatmul.mubr.msk.bf16.vlgmr.msra.gmra.mxu1 %vm223_vm7, %v2647_v63  ;;  %v1573_v63 = vrot.slane %v3862_v37, %v1572_v57 }
 0xa16   :  { %3404 = vmatprep.mubr.msk.bf16.mxu1 %vm3673_vm1, %v3672_v15 }
 0xa76   :  { %v1654_v58 = vpop.f32.mrf.mxu1 }
 0xa77   :  { %v4105_v61 = vmul.f32 0.35355338, %v1654_v58 }
 0xa78   :  { %v3308_v43 = vpop.f32.mrf.mxu1 }
 0xa79   :  { %v1661_v12 = vsel %vm223_vm7, %v4105_v61, -inf }
 0xa7a   :  { %1662 = vmax.xlane.f32.xlu0 %v1661_v12  ;;  %v1657_v17 = vpop.f32.mrf.mxu1 }
 0xa7c   :  { %v3309_v19 = vpop.f32.mrf.mxu1 }
 0xa7e   :  { %v1803_v22 = vpop.f32.mrf.mxu1 }
 0xa7f   :  { %v4109_v23 = vmul.f32 0.35355338, %v1803_v22 }
 0xa80   :  { %v3320_v0 = vpop.f32.mrf.mxu1 }
 0xa81   :  { %v1810_v24 = vsel %vm223_vm7, %v4109_v23, -inf }
 0xa82   :  { %1811 = vmax.xlane.f32.xlu1 %v1810_v24  ;;  %v1806_v25 = vpop.f32.mrf.mxu1 }
 0xa84   :  { %v3321_v5 = vpop.f32.mrf.mxu1 }
 0xa86   :  { %v1948_v6 = vpop.f32.mrf.mxu1 }
 0xa87   :  { %v4113_v44 = vmul.f32 0.35355338, %v1948_v6 }
 0xa88   :  { %v3332_v10 = vpop.f32.mrf.mxu1 }
 0xa89   :  { %v1955_v14 = vsel %vm223_vm7, %v4113_v44, -inf }
 0xa8a   :  { %1956 = vmax.xlane.f32.xlu1 %v1955_v14  ;;  %v1951_v20 = vpop.f32.mrf.mxu1 }
 0xa8c   :  { %v3333_v26 = vpop.f32.mrf.mxu1 }
 0xa8e   :  { %v2093_v29 = vpop.f32.mrf.mxu1 }
 0xa8f   :  { %v4117_v27 = vmul.f32 0.35355338, %v2093_v29 }
 0xa90   :  { %v3344_v30 = vpop.f32.mrf.mxu1 }
 0xa91   :  { %v2100_v31 = vsel %vm223_vm7, %v4117_v27, -inf }
 0xa92   :  { %2101 = vmax.xlane.f32.xlu0 %v2100_v31  ;;  %v2096_v32 = vpop.f32.mrf.mxu1 }
 0xa94   :  { %v3345_v33 = vpop.f32.mrf.mxu1 }
 0xabd   :  { %v2249_v34 = vpop.f32.mrf.mxu1 }
 0xabe   :  { %v2255_v40 = vmul.f32 0.35355338, %v2249_v34 }
 0xabf   :  { %v3356_v41 = vpop.f32.mrf.mxu1 }
 0xac0   :  { %v2256_v38 = vsel %vm223_vm7, %v2255_v40, -inf }
 0xac1   :  { %2257 = vmax.xlane.f32.xlu1 %v2256_v38  ;;  %v2252_v45 = vpop.f32.mrf.mxu1 }
 0xac3   :  { %v3357_v46 = vpop.f32.mrf.mxu1 }
 0xac5   :  { %v2398_v47 = vpop.f32.mrf.mxu1 }
 0xac6   :  { %v4122_v48 = vmul.f32 0.35355338, %v2398_v47 }
 0xac7   :  { %v3368_v49 = vpop.f32.mrf.mxu1 }
 0xac8   :  { %v2405_v50 = vsel %vm223_vm7, %v4122_v48, -inf }
 0xac9   :  { %2406 = vmax.xlane.f32.xlu0 %v2405_v50  ;;  %v2401_v51 = vpop.f32.mrf.mxu1 }
 0xacb   :  { %v3369_v52 = vpop.f32.mrf.mxu1 }
 0xacd   :  { %v2543_v42 = vpop.f32.mrf.mxu1 }
 0xace   :  { %v2549_v19 = vmul.f32 0.35355338, %v2543_v42 }
 0xacf   :  { %v3380_v36 = vpop.f32.mrf.mxu1 }
 0xad0   :  { %v2550_v0 = vsel %vm223_vm7, %v2549_v19, -inf }
 0xad1   :  { %v2546_v39 = vpop.f32.mrf.mxu1 }
 0xad3   :  { %v3381_v35 = vpop.f32.mrf.mxu1 }
 0xad5   :  { %v2688_v54 = vpop.f32.mrf.mxu1 }
 0xad6   :  { %v2694_v25 = vmul.f32 0.35355338, %v2688_v54 }
 0xad7   :  { %v3392_v56 = vpop.f32.mrf.mxu1 }
 0xad9   :  { %v2691_v60 = vpop.f32.mrf.mxu1 }
 0xadb   :  { %v3393_v62 = vpop.f32.mrf.mxu1 }
 0xadf   :  { %1575 = vrot.lane.b32.xlu0 %v1573_v63, %s3674_s7 }
 0xb03   :  { %v1663_v1 = vpop.xlane.xlu0 %1662 }
 0xb04   :  { %v1664_v17 = vsub.f32 %v4105_v61, %v1663_v1  ;;  %v2695_v61 = vsel %vm223_vm7, %v2694_v25, -inf }
 0xb0b   :  { %v1812_v16 = vpop.xlane.xlu1 %1811 }
 0xb0c   :  { %v1813_v6 = vsub.f32 %v4109_v23, %v1812_v16 }
 0xb0e   :  { %v1814_v10 = vmul.f32 1.442695, %v1813_v6 }
 0xb13   :  { %v1957_v58 = vpop.xlane.xlu1 %1956 }
 0xb14   :  { %v1958_v14 = vsub.f32 %v4113_v44, %v1957_v58 }
 0xb16   :  { %v1959_v20 = vmul.f32 1.442695, %v1958_v14 }
 0xb1b   :  { %v2102_v55 = vpop.xlane.xlu0 %2101 }
 0xb1c   :  { %v2103_v26 = vsub.f32 %v4117_v27, %v2102_v55 }
 0xb1e   :  { %v2104_v29 = vmul.f32 1.442695, %v2103_v26 }
 0xb4a   :  { %v2258_v37 = vpop.xlane.xlu1 %2257 }
 0xb4b   :  { %v2259_v43 = vsub.f32 %v2255_v40, %v2258_v37 }
 0xb4d   :  { %v2260_v12 = vmul.f32 1.442695, %v2259_v43 }
 0xb4f   :  { %3606 = vpow2.f32 %v2260_v12 }
 0xb52   :  { %v2407_v2 = vpop.xlane.xlu0 %2406 }
 0xb53   :  { %v2408_v40 = vsub.f32 %v4122_v48, %v2407_v2 }
 0xb55   :  { %v2409_v41 = vmul.f32 1.442695, %v2408_v40 }
 0xb56   :  { %v1576_v3 = vpop.permute.xlu0 %1575 }
 0xb57   :  { %v1578_v4 = vadd.f32 %v1576_v3, %v4044_v13  ;;  %v1579_v7 = vadd.f32 %v1576_v3, %v4049_v21  ;;  %v1665_v13 = vmul.f32 1.442695, %v1664_v17 }
 0xb59   :  { %v1673_v8 = vpack.c.bf16 %v1578_v4, %v1578_v4  ;;  %v4135_v9 = vpack.c.bf16 %v1579_v7, %v1579_v7  ;;  %3608 = vpow2.f32 %v1665_v13 }
 0xb5a   :  { %3610 = vpow2.f32 %v1814_v10 }
 0xb5b   :  { %1967 = vrot.lane.b32.xlu0 %v1673_v8, %s3681_s14  ;;  %1675 = vrot.lane.b32.xlu1 %v1673_v8, %s3678_s11  ;;  %3612 = vpow2.f32 %v1959_v20 }
 0xb5c   :  { %v4140_v21 = vpop.eup %3606  ;;  %3614 = vpow2.f32 %v2104_v29 }
 0xb5d   :  { %v2262_v22 = vsel %vm223_vm7, %v4140_v21, 0.0  ;;  %3616 = vpow2.f32 %v2409_v41 }
 0xb5f   :  { %2270 = vrot.lane.b32.xlu0 %v4135_v9, %s3678_s11 }
 0xb66   :  { %v3609_v24 = vpop.eup %3608 }
 0xb67   :  { %v1667_v5 = vsel %vm223_vm7, %v3609_v24, 0.0  ;;  %v3611_v30 = vpop.eup %3610 }
 0xb68   :  { %v1816_v31 = vsel %vm223_vm7, %v3611_v30, 0.0  ;;  %v4152_v32 = vpop.eup %3612 }
 0xb69   :  { %v1961_v33 = vsel %vm223_vm7, %v4152_v32, 0.0  ;;  %v4156_v23 = vpop.eup %3614 }
 0xb6a   :  { %v2106_v44 = vsel %vm223_vm7, %v4156_v23, 0.0  ;;  %v4164_v38 = vpop.eup %3616 }
 0xb6b   :  { %v2411_v45 = vsel %vm223_vm7, %v4164_v38, 0.0 }
 0xb7e   :  { %2263 = vadd.xlane.f32.xlu0 %v2262_v22 }
 0xb7f   :  { %2551 = vmax.xlane.f32.xlu1 %v2550_v0 }
 0xb83   :  { %1668 = vadd.xlane.f32.xlu1 %v1667_v5 }
 0xb87   :  { %2696 = vmax.xlane.f32.xlu1 %v2695_v61 }
 0xb98   :  { %1822 = vrot.lane.b32.xlu1 %v1673_v8, %s3680_s13 }
 0xbbc   :  { %1817 = vadd.xlane.f32.xlu1 %v1816_v31 }
 0xbc0   :  { %1962 = vadd.xlane.f32.xlu1 %v1961_v33 }
 0xbc4   :  { %2107 = vadd.xlane.f32.xlu1 %v2106_v44 }
 0xbcd   :  { %v1676_v27 = vpop.permute.xlu1 %1675  ;;  %v1968_v2 = vpop.permute.xlu0 %1967 }
 0xbce   :  { %v1681_v34 = vsel %vm227_vm6, %v1676_v27, 0 }
 0xbcf   :  { %3311 = vmatpush3.bf16.msra.mxu0 %v1681_v34 }
 0xbd0   :  { %3322 = vmatprep.subr.bf16.mxu0 %v3672_v15 }
 0xbd1   :  { %v2271_v7 = vpop.permute.xlu0 %2270 }
 0xbd2   :  { %v2276_v0 = vsel %vm227_vm6, %v2271_v7, 0 }
 0xbd5   :  { %2112 = vrot.lane.b32.xlu1 %v1673_v8, %s3679_s12 }
 0xbf9   :  { %2412 = vadd.xlane.f32.xlu1 %v2411_v45 }
 0xc07   :  { %v2264_v37 = vpop.xlane.xlu0 %2263 }
 0xc08   :  { %v2552_v46 = vpop.xlane.xlu1 %2551 }
 0xc09   :  { %v2553_v47 = vsub.f32 %v2549_v19, %v2552_v46 }
 0xc0b   :  { %v2554_v49 = vmul.f32 1.442695, %v2553_v47 }
 0xc0c   :  { %v1669_v50 = vpop.xlane.xlu1 %1668 }
 0xc0d   :  { %3618 = vpow2.f32 %v2554_v49 }
 0xc0e   :  { %3620 = vrcp.f32 %v1669_v50 }
 0xc10   :  { %v2697_v51 = vpop.xlane.xlu1 %2696 }
 0xc11   :  { %v2698_v52 = vsub.f32 %v2694_v25, %v2697_v51 }
 0xc13   :  { %v2699_v42 = vmul.f32 1.442695, %v2698_v52 }
 0xc14   :  { %v1823_v54 = vpop.permute.xlu1 %1822 }
 0xc15   :  { %3622 = vpow2.f32 %v2699_v42  ;;  %v1828_v60 = vsel %vm227_vm6, %v1823_v54, 0 }
 0xc1a   :  { %v4168_v36 = vpop.eup %3618 }
 0xc1b   :  { %v3621_v48 = vpop.eup %3620  ;;  %v2556_v39 = vsel %vm223_vm7, %v4168_v36, 0.0 }
 0xc1c   :  { %2557 = vadd.xlane.f32.xlu0 %v2556_v39  ;;  %v1671_v35 = vmul.f32 %v3621_v48, %v3609_v24 }
 0xc1e   :  { %v1672_v56 = vpack.c.bf16 %v1671_v35, %v1671_v35 }
 0xc20   :  { %3313 = vmatmul.mubr.msk.bf16.vlgmr.msra.gmra.mxu0 %vm223_vm7, %v1672_v56 }
 0xc21   :  { %3323 = vmatpush3.bf16.msra.mxu0 %v1828_v60  ;;  %3324 = vmatprep.mubr.msk.bf16.mxu0 %vm3673_vm1, %v3672_v15 }
 0xc22   :  { %v4176_v62 = vpop.eup %3622  ;;  %3334 = vmatprep.subr.bf16.mxu0 %v3672_v15 }
 0xc23   :  { %v2701_v63 = vsel %vm223_vm7, %v4176_v62, 0.0 }
 0xc24   :  { %2702 = vadd.xlane.f32.xlu1 %v2701_v63 }
 0xc32   :  { %2417 = vrot.lane.b32.xlu0 %v4135_v9, %s3680_s13 }
 0xc35   :  { %2562 = vrot.lane.b32.xlu1 %v4135_v9, %s3681_s14 }
 0xc36   :  { %2707 = vrot.lane.b32.xlu0 %v4135_v9, %s3679_s12  ;;  %v1973_v9 = vsel %vm227_vm6, %v1968_v2, 0 }
 0xc39   :  { %2775 = vrot.lane.b32.xlu1 %v3935_v28, %s3674_s7 }
 0xc3a   :  { %2777 = vrot.lane.b32.xlu0 %v3973_v53, %s3674_s7 }
 0xc45   :  { %v1818_v1 = vpop.xlane.xlu1 %1817 }
 0xc46   :  { %3624 = vrcp.f32 %v1818_v1 }
 0xc49   :  { %v1963_v55 = vpop.xlane.xlu1 %1962 }
 0xc4a   :  { %3626 = vrcp.f32 %v1963_v55 }
 0xc4d   :  { %v2108_v3 = vpop.xlane.xlu1 %2107 }
 0xc4e   :  { %3628 = vrcp.f32 %v2108_v3 }
 0xc4f   :  { %3630 = vrcp.f32 %v2264_v37 }
 0xc51   :  { %v2113_v53 = vpop.permute.xlu1 %2112 }
 0xc52   :  { %v2118_v17 = vsel %vm227_vm6, %v2113_v53, 0 }
 0xc53   :  { %v3625_v4 = vpop.eup %3624 }
 0xc54   :  { %v1820_v8 = vmul.f32 %v3625_v4, %v3611_v30 }
 0xc56   :  { %v1821_v16 = vpack.c.bf16 %v1820_v8, %v1820_v8 }
 0xc57   :  { %v3627_v58 = vpop.eup %3626 }
 0xc58   :  { %3325 = vmatmul.mubr.msk.bf16.vlgmr.msra.gmra.mxu0 %vm223_vm7, %v1821_v16  ;;  %v1965_v28 = vmul.f32 %v3627_v58, %v4152_v32 }
 0xc59   :  { %3335 = vmatpush3.bf16.msra.mxu0 %v1973_v9  ;;  %3336 = vmatprep.mubr.msk.bf16.mxu0 %vm3673_vm1, %v3672_v15 }
 0xc5a   :  { %3346 = vmatprep.subr.bf16.mxu0 %v3672_v15  ;;  %v1966_v43 = vpack.c.bf16 %v1965_v28, %v1965_v28 }
 0xc5b   :  { %v3629_v12 = vpop.eup %3628 }
 0xc5c   :  { %v2110_v13 = vmul.f32 %v3629_v12, %v4156_v23  ;;  %v3631_v22 = vpop.eup %3630 }
 0xc5d   :  { %v2266_v24 = vmul.f32 %v3631_v22, %v4140_v21 }
 0xc5e   :  { %v2111_v19 = vpack.c.bf16 %v2110_v13, %v2110_v13 }
 0xc5f   :  { %v2267_v25 = vpack.c.bf16 %v2266_v24, %v2266_v24 }
 0xc60   :  { %3337 = vmatmul.mubr.msk.bf16.vlgmr.msra.gmra.mxu0 %vm223_vm7, %v1966_v43 }
 0xc61   :  { %3347 = vmatpush3.bf16.msra.mxu0 %v2118_v17  ;;  %3348 = vmatprep.mubr.msk.bf16.mxu0 %vm3673_vm1, %v3672_v15 }
 0xc62   :  { %3358 = vmatprep.subr.bf16.mxu0 %v3672_v15 }
 0xc68   :  { %3349 = vmatmul.mubr.msk.bf16.vlgmr.msra.gmra.mxu0 %vm223_vm7, %v2111_v19 }
 0xc69   :  { %3359 = vmatpush3.bf16.msra.mxu0 %v2276_v0  ;;  %3360 = vmatprep.mubr.msk.bf16.mxu0 %vm3673_vm1, %v3672_v15 }
 0xc6a   :  { %3370 = vmatprep.subr.bf16.mxu0 %v3672_v15 }
 0xc70   :  { %3361 = vmatmul.mubr.msk.bf16.vlgmr.msra.gmra.mxu0 %vm223_vm7, %v2267_v25 }
 0xc71   :  { %3372 = vmatprep.mubr.msk.bf16.mxu0 %vm3673_vm1, %v3672_v15 }
 0xc82   :  { %v2413_v5 = vpop.xlane.xlu1 %2412 }
 0xc83   :  { %3632 = vrcp.f32 %v2413_v5 }
 0xc90   :  { %v3633_v61 = vpop.eup %3632 }
 0xc91   :  { %v2415_v10 = vmul.f32 %v3633_v61, %v4164_v38 }
 0xc93   :  { %v2416_v21 = vpack.c.bf16 %v2415_v10, %v2415_v10 }
 0xca5   :  { %v2558_v6 = vpop.xlane.xlu0 %2557 }
 0xca6   :  { %3634 = vrcp.f32 %v2558_v6 }
 0xca9   :  { %v2418_v14 = vpop.permute.xlu0 %2417 }
 0xcaa   :  { %v2423_v20 = vsel %vm227_vm6, %v2418_v14, 0 }
 0xcab   :  { %3371 = vmatpush3.bf16.msra.mxu0 %v2423_v20 }
 0xcac   :  { %3382 = vmatprep.subr.bf16.mxu0 %v3672_v15 }
 0xcad   :  { %v2703_v26 = vpop.xlane.xlu1 %2702  ;;  %v2708_v33 = vpop.permute.xlu0 %2707 }
 0xcae   :  { %3636 = vrcp.f32 %v2703_v26  ;;  %3373 = vmatmul.mubr.msk.bf16.vlgmr.msra.gmra.mxu0 %vm223_vm7, %v2416_v21  ;;  %v2713_v44 = vsel %vm227_vm6, %v2708_v33, 0  ;;  %v2773_v33 = vsub.s32 5, %v3756_v18  ;;  %v3564_v18 = vld [vmem:[%s4300_s2 + $0x8] sm:$0xff]  }
 0xcaf   :  { %3384 = vmatprep.mubr.msk.bf16.mxu0 %vm3673_vm1, %v3672_v15 }
 0xcb1   :  { %v2563_v29 = vpop.permute.xlu1 %2562  ;;  %v2778_v47 = vpop.permute.xlu0 %2777 }
 0xcb2   :  { %v2568_v30 = vsel %vm227_vm6, %v2563_v29, 0  ;;  %3401 = vmatpush3.bf16.msra.mxu1 %v2778_v47 }
 0xcb3   :  { %v3635_v31 = vpop.eup %3634  ;;  %3383 = vmatpush3.bf16.msra.mxu0 %v2568_v30  ;;  %3402 = vmatprep.subr.bf16.mxu1 %v3672_v15 }
 0xcb4   :  { %3394 = vmatprep.subr.bf16.mxu0 %v3672_v15  ;;  %v2560_v32 = vmul.f32 %v3635_v31, %v4168_v36 }
 0xcb5   :  { %v2776_v37 = vpop.permute.xlu1 %2775 }
 0xcb6   :  { %v2561_v23 = vpack.c.bf16 %v2560_v32, %v2560_v32  ;;  %3403 = vmatpush3.bf16.msra.mxu1 %v2776_v37 }
 0xcb7   :  { %3416 = vmatprep.subr.bf16.mxu1 %v3672_v15 }
 0xcb8   :  { %3385 = vmatmul.mubr.msk.bf16.vlgmr.msra.gmra.mxu0 %vm223_vm7, %v2561_v23  ;;  %v3648_v23 = vld [vmem:[%s4301_s3 + $0x8] sm:$0x3f] }
 0xcb9   :  { %3395 = vmatpush3.bf16.msra.mxu0 %v2713_v44  ;;  %3396 = vmatprep.mubr.msk.bf16.mxu0 %vm3673_vm1, %v3672_v15  ;;  %v2774_v44 = vrot.slane %v3648_v23, %v2773_v33 }
 0xcba   :  { %3408 = vmatprep.subr.bf16.mxu0 %v3672_v15 }
 0xcbb   :  { %v3637_v27 = vpop.eup %3636 }
 0xcbc   :  { %v2705_v34 = vmul.f32 %v3637_v27, %v4176_v62 }
 0xcbe   :  { %v2706_v40 = vpack.c.bf16 %v2705_v34, %v2705_v34 }
 0xcc0   :  { %3397 = vmatmul.mubr.msk.bf16.vlgmr.msra.gmra.mxu0 %vm223_vm7, %v2706_v40 }
 0xcc1   :  { %3412 = vmatprep.mubr.msk.bf16.mxu0 %vm3673_vm1, %v3672_v15 }
 0xce0   :  { %v1717_v41 = vpop.f32.mrf.mxu0 }
 0xce2   :  { %v3314_v38 = vpop.f32.mrf.mxu0 }
 0xce4   :  { %v1720_v45 = vpop.f32.mrf.mxu0 }
 0xce6   :  { %v3315_v46 = vpop.f32.mrf.mxu0 }
 0xd18   :  { %v1864_v49 = vpop.f32.mrf.mxu0 }
 0xd1a   :  { %v3326_v50 = vpop.f32.mrf.mxu0 }
 0xd1c   :  { %v1867_v51 = vpop.f32.mrf.mxu0 }
 0xd1e   :  { %v3327_v52 = vpop.f32.mrf.mxu0 }
 0xd20   :  { %v2009_v42 = vpop.f32.mrf.mxu0 }
 0xd22   :  { %v3338_v36 = vpop.f32.mrf.mxu0 }
 0xd24   :  { %v2012_v48 = vpop.f32.mrf.mxu0 }
 0xd26   :  { %v3339_v39 = vpop.f32.mrf.mxu0 }
 0xd28   :  { %v2154_v35 = vpop.f32.mrf.mxu0 }
 0xd2a   :  { %v3350_v54 = vpop.f32.mrf.mxu0 }
 0xd2c   :  { %v2157_v56 = vpop.f32.mrf.mxu0 }
 0xd2e   :  { %v3351_v60 = vpop.f32.mrf.mxu0 }
 0xd2f   :  { %v3561_v60 = vld [vmem:[%s4299_s1 + $0x8] ss:$12 sps:$4 sm:$0xff]  }
 0xd30   :  { %v2312_v62 = vpop.f32.mrf.mxu0 }
 0xd32   :  { %v3362_v63 = vpop.f32.mrf.mxu0 }
 0xd34   :  { %v2315_v1 = vpop.f32.mrf.mxu0 }
 0xd36   :  { %v3363_v55 = vpop.f32.mrf.mxu0 }
 0xd6e   :  { %v2459_v2 = vpop.f32.mrf.mxu0 }
 0xd6f   :  { %v3539_v3 = vpack.i.bf16 %v2459_v2, %v1864_v49 }
 0xd70   :  { %v3374_v4 = vpop.f32.mrf.mxu0 }
 0xd71   :  { %3540 = vrot.lane.b32.xlu0 %v3539_v3, %s3686_s25 }
 0xd72   :  { %v2462_v7 = vpop.f32.mrf.mxu0 }
 0xd74   :  { %v3375_v8 = vpop.f32.mrf.mxu0 }
 0xd78   :  { %v2604_v16 = vpop.f32.mrf.mxu0 }
 0xd79   :  { %v3544_v58 = vpack.i.bf16 %v2604_v16, %v2009_v42 }
 0xd7a   :  { %v3386_v9 = vpop.f32.mrf.mxu0 }
 0xd7b   :  { %3545 = vrot.lane.b32.xlu0 %v3544_v58, %s3687_s26 }
 0xd7c   :  { %v2607_v28 = vpop.f32.mrf.mxu0 }
 0xd7e   :  { %v3387_v53 = vpop.f32.mrf.mxu0 }
 0xd80   :  { %v2749_v43 = vpop.f32.mrf.mxu0 }
 0xd81   :  { %v3549_v12 = vpack.i.bf16 %v2749_v43, %v2154_v35 }
 0xd82   :  { %v3398_v17 = vpop.f32.mrf.mxu0 }
 0xd83   :  { %3550 = vrot.lane.b32.xlu0 %v3549_v12, %s3688_s27  ;;  %v3649_v17 = vld [vmem:[%s4301_s3] sm:$0xff] }
 0xd84   :  { %v2752_v13 = vpop.f32.mrf.mxu0 }
 0xd85   :  { %v2850_v13 = vrot.slane %v3649_v17, %v1572_v57  ;;  %v3565_v57 = vld [vmem:[%s4300_s2] sm:$0xff]  }
 0xd86   :  { %v3399_v19 = vpop.f32.mrf.mxu0 }
 0xde3   :  { %v3541_v22 = vpop.permute.xlu0 %3540 }
 0xde4   :  { %v3543_v24 = vunpack.i.h.bf16 %v3541_v22  ;;  %v3542_v25 = vunpack.i.l.bf16 %v3541_v22 }
 0xde6   :  { %v2767_v10 = vsel %vm223_vm7, %v2312_v62, %v3543_v24  ;;  %v2172_v14 = vsel %vm223_vm7, %v1717_v41, %v3542_v25  ;;  %v3562_v62 = vld [vmem:[%s4300_s2 + $0x18] sm:$0xff]  }
 0xded   :  { %v3546_v0 = vpop.permute.xlu0 %3545 }
 0xdee   :  { %v3548_v5 = vunpack.i.h.bf16 %v3546_v0  ;;  %v3547_v61 = vunpack.i.l.bf16 %v3546_v0  ;;  %v2876_v0 = vrot.slane %v3649_v17, %v2773_v33 }
 0xdf0   :  { %v2768_v26 = vsel %vm783_vm8, %v2767_v10, %v3548_v5  ;;  %v2173_v29 = vsel %vm783_vm8, %v2172_v14, %v3547_v61 }
 0xdf5   :  { %v3551_v6 = vpop.permute.xlu0 %3550 }
 0xdf6   :  { %v3553_v20 = vunpack.i.h.bf16 %v3551_v6  ;;  %v3552_v21 = vunpack.i.l.bf16 %v3551_v6 }
 0xdf8   :  { %v2769_v30 = vsel %vm785_vm9, %v2768_v26, %v3553_v20  ;;  %v2174_v31 = vsel %vm785_vm9, %v2173_v29, %v3552_v21  ;;  %v3563_v20 = vld [vmem:[%s4300_s2 + $0x10] sm:$0xff]   ;;  %v3079_v21 = vld [vmem:[%s4302_s4] ss:$0 sm:$0xff]  ;;  %s3689_s2 = smov [#allocation2]  }
 0xdf9   :  { %v2770_v32 = vpack.c.bf16 %v2769_v30, %v2174_v31  ;;  %s3027_s4 = sshll.u32 %s3689_s2, 4  ;;  %s3028_s4 = int_to_ptr.vmem [resolvable:$true] %s3027_s4 }
 0xdfa   :  { %s3650_s26 = scalar_lea.vmem %s3028_s4, 256  ;;  %p3655_p1 = scmp.lt.s32.totalorder %s3028_s4, %s3028_s4 }
 0xdfb   :  { %3405 = vmatmul.mubr.msk.bf16.vlgmr.msra.gmra.mxu1 %vm47_vm0, %v2770_v32  ;;  %p3651_p0 = scmp.ne.s32.totalorder %s3028_s4, %s3650_s26  ;;  %p3656_p2 = scmp.lt.s32.totalorder %s3650_s26, %s3650_s26 }
 0xdfc   :  { %3424 = vmatprep.mubr.msk.bf16.mxu1 %vm3673_vm1, %v3672_v15  ;;  %3417 = vmatpush3.bf16.msra.mxu1 %v3562_v62 }
 0xdfd   :  { %3418 = vmatprep.subr.bf16.mxu1 %v3672_v15  ;;  %p3657_p3 = por %p3656_p2, %p3655_p1 }
 0xdff   :  { %p3658_p4 = pnand %p3657_p3, %p3651_p0 }
 0xe00   :  { %3419 = vmatpush3.bf16.msra.mxu1 %v3563_v20 }
 0xe01   :  { %3420 = vmatprep.subr.bf16.mxu1 %v3672_v15 }
 0xe04   :  { %3421 = vmatpush3.bf16.msra.mxu1 %v3564_v18 }
 0xe05   :  { %3422 = vmatprep.subr.bf16.mxu1 %v3672_v15 }
 0xe08   :  { %3423 = vmatpush3.bf16.msra.mxu1 %v3565_v57 }
 0xebb   :  { %v2818_v27 = vpop.f32.mrf.mxu1 }
 0xebc   :  { %v2819_v34 = vadd.f32 %v2818_v27, %v2774_v44 }
 0xebd   :  { %v3406_v40 = vpop.f32.mrf.mxu1 }
 0xebe   :  { %v2825_v41 = vadd.f32 %v4032_v59, %v2819_v34 }
 0xebf   :  { %v2821_v38 = vpop.f32.mrf.mxu1 }
 0xec0   :  { %v2822_v45 = vadd.f32 %v2821_v38, %v2774_v44  ;;  %v2827_v46 = vsel %vm47_vm0, %v2825_v41, 0.0 }
 0xec1   :  { %2828 = vadd.xlane.f32.xlu0 %v2827_v46  ;;  %v3407_v47 = vpop.f32.mrf.mxu1 }
 0xec2   :  { %v2826_v49 = vadd.f32 %v4038_v11, %v2822_v45  ;;  %v3560_v11 = vld [vmem:[%s4299_s1 + $0x20] ss:$12 sps:$4 sm:$0xff]  }
 0xec3   :  { %3409 = vmatpush3.bf16.msra.mxu0 %v3560_v11 }
 0xec4   :  { %v2830_v50 = vsel %vm47_vm0, %v2826_v49, 0.0  ;;  %3410 = vmatprep.subr.bf16.mxu0 %v3672_v15  ;;  %v3083_v15 = vld [vmem:[%s4303_s5] ss:$0 sm:$0xff] }
 0xec5   :  { %2831 = vadd.xlane.f32.xlu1 %v2830_v50 }
 0xec7   :  { %3411 = vmatpush3.bf16.msra.mxu0 %v3561_v60 }
 0xf4a   :  { %v2829_v51 = vpop.xlane.xlu0 %2828 }
 0xf4b   :  { %v2833_v52 = vmul.f32 0.03125, %v2829_v51 }
 0xf4d   :  { %v2835_v42 = vsub.f32 %v2825_v41, %v2833_v52 }
 0xf4e   :  { %v2832_v36 = vpop.xlane.xlu1 %2831 }
 0xf4f   :  { %v2834_v48 = vmul.f32 0.03125, %v2832_v36  ;;  %v2837_v39 = vmul.f32 %v2835_v42, %v2835_v42  ;;  %v2851_v22 = vmul.f32 %v2850_v13, %v2835_v42 }
 0xf51   :  { %v2836_v35 = vsub.f32 %v2826_v49, %v2834_v48  ;;  %v2839_v59 = vsel %vm47_vm0, %v2837_v39, 0.0 }
 0xf52   :  { %2840 = vadd.xlane.f32.xlu0 %v2839_v59 }
 0xf53   :  { %v2838_v54 = vmul.f32 %v2836_v35, %v2836_v35  ;;  %v2852_v24 = vmul.f32 %v2850_v13, %v2836_v35 }
 0xf55   :  { %v2842_v56 = vsel %vm47_vm0, %v2838_v54, 0.0 }
 0xf56   :  { %2843 = vadd.xlane.f32.xlu0 %v2842_v56 }
 0xfdb   :  { %v2841_v63 = vpop.xlane.xlu0 %2840 }
 0xfdc   :  { %v2845_v1 = vmul.f32 0.032258064, %v2841_v63 }
 0xfde   :  { %3638 = vrsqrt.f32 %v2845_v1  ;;  %vm2855_vm10 = vcmp.eq.f32.partialorder %v2845_v1, inf  ;;  %v2858_v7 = vand.u32 2147483648, %v2845_v1  ;;  %vm2857_vm11 = vcmp.eq.f32.partialorder %v2845_v1, 0.0 }
 0xfdf   :  { %v2844_v55 = vpop.xlane.xlu0 %2843 }
 0xfe0   :  { %v2846_v2 = vmul.f32 0.032258064, %v2844_v55 }
 0xfe2   :  { %3640 = vrsqrt.f32 %v2846_v2  ;;  %vm2862_vm12 = vcmp.eq.f32.partialorder %v2846_v2, inf  ;;  %v2865_v28 = vand.u32 2147483648, %v2846_v2  ;;  %vm2864_vm13 = vcmp.eq.f32.partialorder %v2846_v2, 0.0 }
 0xfeb   :  { %v3639_v3 = vpop.eup %3638 }
 0xfec   :  { %v2854_v4 = vmul.f32 %v3639_v3, %v2845_v1 }
 0xfee   :  { %v2856_v8 = vsel %vm2855_vm10, %v2845_v1, %v2854_v4 }
 0xfef   :  { %v3641_v16 = vpop.eup %3640  ;;  %v2859_v58 = vsel %vm2857_vm11, %v2858_v7, %v2856_v8 }
 0xff0   :  { %v2867_v37 = vadd.f32 1e-06, %v2859_v58  ;;  %v2861_v9 = vmul.f32 %v3641_v16, %v2846_v2 }
 0xff2   :  { %3642 = vrcp.f32 %v2867_v37  ;;  %v2863_v53 = vsel %vm2862_vm12, %v2846_v2, %v2861_v9 }
 0xff3   :  { %v2866_v43 = vsel %vm2864_vm13, %v2865_v28, %v2863_v53 }
 0xff4   :  { %v2868_v12 = vadd.f32 1e-06, %v2866_v43 }
 0xff6   :  { %3644 = vrcp.f32 %v2868_v12 }
 0xfff   :  { %v3643_v19 = vpop.eup %3642 }
0x1000   :  { %v2870_v25 = vmul.f32 %v3643_v19, %v2851_v22 }
0x1002   :  { %v2877_v6 = vadd.f32 %v2876_v0, %v2870_v25 }
0x1003   :  { %v3645_v5 = vpop.eup %3644 }
0x1004   :  { %v2872_v61 = vmul.f32 %v3645_v5, %v2852_v24 }
0x1006   :  { %v2878_v10 = vadd.f32 %v2876_v0, %v2872_v61 }
0x1008   :  { %v2879_v14 = vpack.c.bf16 %v2878_v10, %v2877_v6 }
0x100a   :  { %3413 = vmatmul.mubr.msk.bf16.vlgmr.msra.gmra.mxu0 %vm47_vm0, %v2879_v14 }
0x10ca   :  { %v2935_v26 = vpop.f32.mrf.mxu0 }
0x10cb   :  { %v2936_v30 = vadd.f32 %v3079_v21, %v2935_v26 }
0x10cc   :  { %v3414_v29 = vpop.f32.mrf.mxu0 }
0x10cd   :  { %v2942_v23 = vmax.f32 %v2936_v30, 0.0 }
0x10ce   :  { %v2938_v31 = vpop.f32.mrf.mxu0 }
0x10cf   :  { %v2939_v32 = vadd.f32 %v3079_v21, %v2938_v31 }
0x10d0   :  { %v3415_v33 = vpop.f32.mrf.mxu0 }
0x10d1   :  { %v2943_v44 = vmax.f32 %v2939_v32, 0.0 }
0x10d3   :  { %v2944_v27 = vpack.c.bf16 %v2943_v44, %v2942_v23 }
0x10d5   :  { %3425 = vmatmul.mubr.msk.bf16.vlgmr.msra.gmra.mxu1 %vm2975_vm14, %v2944_v27 }
0x1195   :  { %v3013_v34 = vpop.f32.mrf.mxu1 }
0x1196   :  { %v3014_v40 = vadd.f32 %v3083_v15, %v3013_v34 }
0x1197   :  { %v3426_v41 = vpop.f32.mrf.mxu1 }
0x1198   :  { %3020 = vst.msk [vmem:[#allocation2] sm:$0xff] %vm47_vm0, %v3014_v40 }
0x1199   :  { %v3016_v38 = vpop.f32.mrf.mxu1 }
0x119a   :  { %v3017_v45 = vadd.f32 %v3083_v15, %v3016_v38 }
0x119b   :  { %v3427_v46 = vpop.f32.mrf.mxu1 }
0x119c   :  { %3021 = vst.msk [vmem:[#allocation2 + $0x8] sm:$0xff] %vm47_vm0, %v3017_v45 }
0x119d   :  { %3661 = shalt.err (!%p3658_p4)
}
0x119e   :  { %s3690_s5 = smov 128  }
0x119f   :  { %3033 = dma.vmem_to_hbm [thread:$0]  %s3028_s4, 256, %s4304_s6, [#allocation3], %s3690_s5, %s3690_s5, %s3686_s25  }
0x11a0   :  { %3670 = dma.done.wait [#allocation3], 256  }
0x11a1   :  { %3671 = vsyncadd [#allocation3], 4294967040 }
0x11a2   :  { %3037 = vsyncpa [#allocation3], 1 }

</bundles_post_ra>
